<compile_context>
chip_gen: v5e
topology: v5e:2x2
jax: 0.10.0
libtpu: 0.0.40
codegen_flags: <defaults>
</compile_context>

<pallas_src>
import functools

import jax
import jax.numpy as jnp
from jax.experimental import pallas as pl
from jax.experimental.pallas import tpu as pltpu


def _swiglu_ffn_kernel(x_ref, wg_ref, wu_ref, wd_ref, o_ref, acc_ref):
    """One (token tile, hidden tile) step of the SwiGLU FFN.

    x_ref:   (tm, dim)
    wg_ref:  (dim, tn)   gate projection tile
    wu_ref:  (dim, tn)   up projection tile
    wd_ref:  (tn, dim)   down projection tile
    o_ref:   (tm, dim)
    acc_ref: (tm, dim) f32 accumulator (persists across hidden tiles)
    """
    j = pl.program_id(1)

    x = x_ref[...]                                                    # (tm, dim)
    g = jnp.dot(x, wg_ref[...], preferred_element_type=jnp.float32)  # (tm, tn)
    u = jnp.dot(x, wu_ref[...], preferred_element_type=jnp.float32)  # (tm, tn)
    h = (g * jax.nn.sigmoid(g)) * u                                   # SiLU(g)*u, f32
    p = jnp.dot(h.astype(wd_ref.dtype), wd_ref[...],
                preferred_element_type=jnp.float32)                   # (tm, dim)

    @pl.when(j == 0)
    def _first():
        acc_ref[...] = p

    @pl.when(j != 0)
    def _accumulate():
        acc_ref[...] += p

    @pl.when(j == pl.num_programs(1) - 1)
    def _finalize():
        o_ref[...] = acc_ref[...].astype(o_ref.dtype)


def _round_up(x, m):
    return (x + m - 1) // m * m


def _vmem_capacity_bytes():
    """Physical VMEM of the current chip, with a conservative fallback."""
    try:
        info = pltpu.get_tpu_info()
        for attr in ("vmem_capacity_bytes", "vmem_size_bytes", "vmem_bytes"):
            v = getattr(info, attr, None)
            if v:
                return int(v)
    except Exception:
        pass
    return 64 * 1024 * 1024  # v7x per-TensorCore (smallest of the targets)


def _vmem_need_bytes(tm, tn, dim, x_bytes, w_bytes):
    double_buffered = 2 * (tm * dim * x_bytes        # x tile
                           + 2 * dim * tn * w_bytes  # gate + up tiles
                           + tn * dim * w_bytes      # down tile
                           + tm * dim * x_bytes)     # out tile
    resident = tm * dim * 4                          # f32 accumulator
    temps = 3 * tm * tn * 4 + tm * dim * 4           # g/u/h + down partial (f32)
    return double_buffered + resident + temps


def _choose_tn(hidden, tn_req):
    tn = min(tn_req, hidden)
    if hidden % tn == 0 and (tn % 128 == 0 or tn == hidden):
        return tn
    for cand in range((tn // 128) * 128, 0, -128):
        if hidden % cand == 0:
            return cand
    return hidden


def _choose_tm(M, dim, tn, x_bytes, w_bytes, vmem_budget):
    m8 = _round_up(M, 8)
    for cand in (1024, 768, 512, 384, 256, 128):
        tm = min(cand, m8)
        if _vmem_need_bytes(tm, tn, dim, x_bytes, w_bytes) <= vmem_budget:
            return tm
    return min(128, m8)


@functools.partial(jax.jit, static_argnames=("tm", "tn"))
def swiglu_ffn(x, w_gate, w_up, w_down, *, tm=None, tn=None):
    """x: (M, dim); w_gate/w_up: (dim, hidden); w_down: (hidden, dim)."""
    M, dim = x.shape
    hidden = w_gate.shape[1]

    x_bytes = jnp.dtype(x.dtype).itemsize
    w_bytes = jnp.dtype(w_gate.dtype).itemsize

    vmem_cap = _vmem_capacity_bytes()
    vmem_budget = vmem_cap - (8 << 20)  # headroom for compiler-internal scratch

    tn = _choose_tn(hidden, 256 if tn is None else tn)
    assert hidden % tn == 0, "hidden must be divisible by tn"
    assert tn % 128 == 0 or tn == hidden, "tn must be a multiple of 128"
    if tm is None:
        tm = _choose_tm(M, dim, tn, x_bytes, w_bytes, vmem_budget)
    tm = min(tm, _round_up(M, 8))

    n_i = pl.cdiv(M, tm)       # partial last token tile handled by Pallas
    n_j = hidden // tn
    grid = (n_i, n_j)

    need = _vmem_need_bytes(tm, tn, dim, x_bytes, w_bytes)
    vmem_limit = max(need + (4 << 20), 32 << 20)
    vmem_limit = min(vmem_limit, vmem_cap - (2 << 20))

    cost = pl.CostEstimate(
        flops=6 * M * dim * hidden,
        transcendentals=M * hidden,
        bytes_accessed=(2 * M * dim * x_bytes            # read x, write out
                        + n_i * 3 * dim * hidden * w_bytes),  # weights per token tile
    )

    return pl.pallas_call(
        _swiglu_ffn_kernel,
        out_shape=jax.ShapeDtypeStruct((M, dim), x.dtype),
        grid_spec=pltpu.PrefetchScalarGridSpec(
            num_scalar_prefetch=0,
            grid=grid,
            in_specs=[
                pl.BlockSpec((tm, dim), lambda i, j: (i, 0)),   # x tile (resident over j)
                pl.BlockSpec((dim, tn), lambda i, j: (0, j)),   # gate tile
                pl.BlockSpec((dim, tn), lambda i, j: (0, j)),   # up tile
                pl.BlockSpec((tn, dim), lambda i, j: (j, 0)),   # down tile
            ],
            out_specs=pl.BlockSpec((tm, dim), lambda i, j: (i, 0)),
            scratch_shapes=[pltpu.VMEM((tm, dim), jnp.float32)],
        ),
        compiler_params=pltpu.CompilerParams(
            dimension_semantics=("parallel", "arbitrary"),
            vmem_limit_bytes=int(vmem_limit),
        ),
        cost_estimate=cost,
    )(x, w_gate, w_up, w_down)


def swiglu_ffn_ref(x, w_gate, w_up, w_down):
    g = x @ w_gate
    u = x @ w_up
    return (jax.nn.silu(g) * u) @ w_down


if __name__ == "__main__":
    # Small but TPU-friendly (lane-dense, tileable) shapes.
    batch, seq, dim, hidden_dim = 2, 64, 256, 512

    key = jax.random.PRNGKey(0)
    kx, kg, ku, kd = jax.random.split(key, 4)

    x = jax.random.normal(kx, (batch, seq, dim), dtype=jnp.float32)

    # Deterministic "Linear" weights, stored as (in_features, out_features).
    bound_g = 1.0 / jnp.sqrt(dim)
    bound_d = 1.0 / jnp.sqrt(hidden_dim)
    w_gate = jax.random.uniform(kg, (dim, hidden_dim), jnp.float32, -bound_g, bound_g)
    w_up = jax.random.uniform(ku, (dim, hidden_dim), jnp.float32, -bound_g, bound_g)
    w_down = jax.random.uniform(kd, (hidden_dim, dim), jnp.float32, -bound_d, bound_d)

    x2d = x.reshape(batch * seq, dim)
    out = swiglu_ffn(x2d, w_gate, w_up, w_down)
    out = jax.block_until_ready(out)

    ref = swiglu_ffn_ref(x2d, w_gate, w_up, w_down)
    assert out.shape == (batch * seq, dim)
    assert jnp.allclose(out, ref, atol=1e-3, rtol=1e-3), "mismatch vs reference"

    # reshape back to (batch, seq, dim) like the torch module's output
    out = out.reshape(batch, seq, dim)
    print("KERNEL_OK")
</pallas_src>

<mosaic_0001>
module attributes {stable_mosaic.version = 11 : i64} {
  func.func @_swiglu_ffn_kernel(%arg0: i32, %arg1: i32, %arg2: memref<128x256xf32, #tpu.memory_space<vmem>>, %arg3: memref<256x256xf32, #tpu.memory_space<vmem>>, %arg4: memref<256x256xf32, #tpu.memory_space<vmem>>, %arg5: memref<256x256xf32, #tpu.memory_space<vmem>>, %arg6: memref<128x256xf32, #tpu.memory_space<vmem>>, %arg7: memref<128x256xf32, #tpu.memory_space<vmem>>) attributes {dimension_semantics = [#tpu.dimension_semantics<parallel>, #tpu.dimension_semantics<arbitrary>], iteration_bounds = array<i64: 1, 2>, scalar_prefetch = 0 : i64, scratch_operands = 1 : i64, tpu.core_type = #tpu.core_type<tc>, window_params = [{transform_indices = @transform_0, window_bounds = array<i64: 128, 256>}, {transform_indices = @transform_1, window_bounds = array<i64: 256, 256>}, {transform_indices = @transform_2, window_bounds = array<i64: 256, 256>}, {transform_indices = @transform_3, window_bounds = array<i64: 256, 256>}, {transform_indices = @transform_4, window_bounds = array<i64: 128, 256>}]} {
    %c0 = arith.constant 0 : index
    %c0_0 = arith.constant 0 : index
    %0 = vector.load %arg2[%c0, %c0_0] : memref<128x256xf32, #tpu.memory_space<vmem>>, vector<128x256xf32>
    %c0_1 = arith.constant 0 : index
    %c0_2 = arith.constant 0 : index
    %1 = vector.load %arg3[%c0_1, %c0_2] : memref<256x256xf32, #tpu.memory_space<vmem>>, vector<256x256xf32>
    %cst = arith.constant dense<0.000000e+00> : vector<128x256xf32>
    %2 = tpu.matmul %0, %1, %cst {dimension_numbers = #tpu.dot_dimension_numbers<[1], [0], [0], [1], [0, 0, 1, 1], [], []>} : vector<128x256xf32>, vector<256x256xf32>, vector<128x256xf32> -> vector<128x256xf32>
    %c0_3 = arith.constant 0 : index
    %c0_4 = arith.constant 0 : index
    %3 = vector.load %arg4[%c0_3, %c0_4] : memref<256x256xf32, #tpu.memory_space<vmem>>, vector<256x256xf32>
    %cst_5 = arith.constant dense<0.000000e+00> : vector<128x256xf32>
    %4 = tpu.matmul %0, %3, %cst_5 {dimension_numbers = #tpu.dot_dimension_numbers<[1], [0], [0], [1], [0, 0, 1, 1], [], []>} : vector<128x256xf32>, vector<256x256xf32>, vector<128x256xf32> -> vector<128x256xf32>
    %5 = arith.negf %2 : vector<128x256xf32>
    %6 = math.exp %5 : vector<128x256xf32>
    %cst_6 = arith.constant 1.000000e+00 : f32
    %7 = vector.broadcast %cst_6 : f32 to vector<128x256xf32>
    %8 = arith.addf %7, %6 : vector<128x256xf32>
    %9 = arith.divf %7, %8 : vector<128x256xf32>
    %10 = arith.mulf %2, %9 : vector<128x256xf32>
    %11 = arith.mulf %10, %4 : vector<128x256xf32>
    %c0_7 = arith.constant 0 : index
    %c0_8 = arith.constant 0 : index
    %12 = vector.load %arg5[%c0_7, %c0_8] : memref<256x256xf32, #tpu.memory_space<vmem>>, vector<256x256xf32>
    %cst_9 = arith.constant dense<0.000000e+00> : vector<128x256xf32>
    %13 = tpu.matmul %11, %12, %cst_9 {dimension_numbers = #tpu.dot_dimension_numbers<[1], [0], [0], [1], [0, 0, 1, 1], [], []>} : vector<128x256xf32>, vector<256x256xf32>, vector<128x256xf32> -> vector<128x256xf32>
    %c0_i32 = arith.constant 0 : i32
    %14 = arith.cmpi eq, %arg1, %c0_i32 : i32
    %15 = arith.extui %14 : i1 to i32
    %c0_i32_10 = arith.constant 0 : i32
    %16 = arith.cmpi ne, %15, %c0_i32_10 : i32
    scf.if %16 {
      %c0_14 = arith.constant 0 : index
      %c0_15 = arith.constant 0 : index
      %23 = vector.load %arg7[%c0_14, %c0_15] : memref<128x256xf32, #tpu.memory_space<vmem>>, vector<128x256xf32>
      tpu.vector_store %arg7[%c0_14, %c0_15], %13 {strides = array<i32>} : memref<128x256xf32, #tpu.memory_space<vmem>>, vector<128x256xf32>,
    } else {
    }
    %c0_i32_11 = arith.constant 0 : i32
    %17 = arith.cmpi ne, %arg1, %c0_i32_11 : i32
    %18 = arith.extui %17 : i1 to i32
    %c0_i32_12 = arith.constant 0 : i32
    %19 = arith.cmpi ne, %18, %c0_i32_12 : i32
    scf.if %19 {
      %c0_14 = arith.constant 0 : index
      %c0_15 = arith.constant 0 : index
      %23 = vector.load %arg7[%c0_14, %c0_15] : memref<128x256xf32, #tpu.memory_space<vmem>>, vector<128x256xf32>
      %24 = arith.addf %23, %13 : vector<128x256xf32>
      %c0_16 = arith.constant 0 : index
      %c0_17 = arith.constant 0 : index
      %25 = vector.load %arg7[%c0_16, %c0_17] : memref<128x256xf32, #tpu.memory_space<vmem>>, vector<128x256xf32>
      tpu.vector_store %arg7[%c0_16, %c0_17], %24 {strides = array<i32>} : memref<128x256xf32, #tpu.memory_space<vmem>>, vector<128x256xf32>,
    } else {
    }
    %c1_i32 = arith.constant 1 : i32
    %20 = arith.cmpi eq, %arg1, %c1_i32 : i32
    %21 = arith.extui %20 : i1 to i32
    %c0_i32_13 = arith.constant 0 : i32
    %22 = arith.cmpi ne, %21, %c0_i32_13 : i32
    scf.if %22 {
      %c0_14 = arith.constant 0 : index
      %c0_15 = arith.constant 0 : index
      %23 = vector.load %arg7[%c0_14, %c0_15] : memref<128x256xf32, #tpu.memory_space<vmem>>, vector<128x256xf32>
      %c0_16 = arith.constant 0 : index
      %c0_17 = arith.constant 0 : index
      %24 = vector.load %arg6[%c0_16, %c0_17] : memref<128x256xf32, #tpu.memory_space<vmem>>, vector<128x256xf32>
      tpu.vector_store %arg6[%c0_16, %c0_17], %23 {strides = array<i32>} : memref<128x256xf32, #tpu.memory_space<vmem>>, vector<128x256xf32>,
    } else {
    }
    return
  }
  func.func @transform_0(%arg0: i32, %arg1: i32) -> (i32, i32) {
    %c0_i32 = arith.constant 0 : i32
    %c0_i32_0 = arith.constant 0 : i32
    return %arg0, %c0_i32 : i32, i32
  }
  func.func @transform_1(%arg0: i32, %arg1: i32) -> (i32, i32) {
    %c0_i32 = arith.constant 0 : i32
    %c0_i32_0 = arith.constant 0 : i32
    return %c0_i32, %arg1 : i32, i32
  }
  func.func @transform_2(%arg0: i32, %arg1: i32) -> (i32, i32) {
    %c0_i32 = arith.constant 0 : i32
    %c0_i32_0 = arith.constant 0 : i32
    return %c0_i32, %arg1 : i32, i32
  }
  func.func @transform_3(%arg0: i32, %arg1: i32) -> (i32, i32) {
    %c0_i32 = arith.constant 0 : i32
    %c0_i32_0 = arith.constant 0 : i32
    return %arg1, %c0_i32 : i32, i32
  }
  func.func @transform_4(%arg0: i32, %arg1: i32) -> (i32, i32) {
    %c0_i32 = arith.constant 0 : i32
    %c0_i32_0 = arith.constant 0 : i32
    return %arg0, %c0_i32 : i32, i32
  }
}

</mosaic_0001>

<bundles_post_ra>
// kernel: swiglu_ffn.1
= control target key start
LH: loop header
LB: loop body
LE: loop exit
PB: predicated region body
PF: predicated region fallthrough
CT: control target
= control target key end

     0   :  { %s4903_s0 = inlined_call_operand.hbm [shape: f32[128,256], index: 0, kind: input, shape index: {}]   ;;  %s4904_s1 = inlined_call_operand.hbm [shape: f32[256,512], index: 1, kind: input, shape index: {}]   ;;  %s4905_s2 = inlined_call_operand.hbm [shape: f32[256,512], index: 2, kind: input, shape index: {}]   ;;  %s4906_s3 = inlined_call_operand.hbm [shape: f32[512,256], index: 3, kind: input, shape index: {}]   ;;  %s4907_s4 = inlined_call_operand.hbm [shape: f32[128,256], index: 4, kind: output, shape index: {}]  }
   0x1   :  { %4913 = sst [smem:[#allocation42_spill]] %s4903_s0 }
   0x2   :  { %4914 = sst [smem:[#allocation43_spill]] %s4904_s1 }
   0x3   :  { %4915 = sst [smem:[#allocation44_spill]] %s4905_s2 }
   0x4   :  { %9 = vsyncpa [#allocation4], 0 }
   0x5   :  { %10 = vsyncpa [#allocation7], 0 }
   0x6   :  { %12 = vsyncpa [#allocation7 + $0x1], 0 }
   0x7   :  { %13 = vsyncpa [#allocation10], 0 }
   0x8   :  { %15 = vsyncpa [#allocation10 + $0x1], 0 }
   0x9   :  { %16 = vsyncpa [#allocation5], 0  ;;  %s2871_s15 = smov 0   ;;  %s2873_s16 = smov 0  }
   0xa   :  { %s2875_s17 = smov 0   ;;  %s2877_s18 = smov 0  }
   0xb   :  { %s2879_s19 = smov 0   ;;  %s2881_s20 = smov 0  }
   0xc LB: > { %s31_s21 = sadd.s32 1, %s2833_s19  ;;  %s67_s22 = sadd.s32 1, %s2825_s17  ;;  %s2837_s20 = sphi %s2881_s20, %s22_s20   ;;  %s2833_s19 = sphi %s2879_s19, %s5088_s19   ;;  %s2829_s18 = sphi %s2877_s18, %s5087_s18   ;;  %s2825_s17 = sphi %s2875_s17, %s5086_s17   ;;  %s2821_s16 = sphi %s2873_s16, %s5085_s16   ;;  %s2817_s15 = sphi %s2871_s15, %s5084_s15  }
   0xd   : > { %p32_p0 = scmp.ge.s32.totalorder %s31_s21, 2  ;;  %p74_p1 = scmp.ne.s32.totalorder %s2825_s17, %s2821_s16 }
   0xe   : > { %p75_p2 = scmp.eq.s32.totalorder %s2837_s20, 0  ;;  %p2440_p5 = scmp.lt.s32.totalorder %s2837_s20, 2 }
   0xf   : > { %s5090_s21 = smov (%p32_p0, %s31_s21), 0  ;;  %s200_s25 = sand.u32 1, %s2837_s20  }
  0x10   : > { %p2908_p3 = por %p75_p2, %p74_p1  ;;  %s64_s24 = ssub.s32 %s2833_s19, %s5090_s21 }
  0x11   : > { %p65_p4 = scmp.eq.s32.totalorder %s64_s24, 0  ;;  %s4908_s26 = sand.u32 1, %s2825_s17  }
  0x12   : > { %s2922_s28 = sshll.u32 %s4908_s26, 9  ;;  %s2407_s29 = sshll.u32 %s2833_s19, 4 }
  0x13   : > { %s2918_s27 = scalar_select %p65_p4, %s2825_s17, %s67_s22  }
  0x14   : > { %s4917_s1 = sld [smem:[#allocation43_spill]]  ;;  %s204_s7 = scalar_lea.vmem [#allocation6], %s2922_s28 }
  0x15   : > { %s212_s8 = sshll.u32 %s204_s7, 4  ;;  %p2931_p6 = pnand %p2440_p5, %p2908_p3  ;;  %s213_s8 = int_to_ptr.vmem [resolvable:$true] %s212_s8 }
  0x16   : > { %s4919_s2 = sld [smem:[#allocation44_spill]]  ;;  %s201_s22 = scalar_lea.sflag [#allocation7], %s200_s25 }
  0x17   : > { %s2839_s24 = smov 512   ;;  %s2840_s30 = smov 256  }
  0x18   : > { %s2841_s5 = smov 16   ;;  %s2943_s23 = sadd.s32 4294967295, %s2837_s20  }
  0x19   : > { %p80_p7 = scmp.ne.s32.totalorder %s2821_s16, %s2817_s15  ;;  %p81_p8 = scmp.eq.s32.totalorder %s2943_s23, 0 }
  0x1a   : > { %s209_s6 = scalar_lea.hbm %s4917_s1, %s2407_s29  ;;  %p2350_p9 = scmp.ge.s32.totalorder %s2837_s20, 1 }
  0x1b   : > { %s210_s9 = sshll.u32 %s209_s6, 4  ;;  %p169_p10 = scmp.lt.s32.totalorder %s2837_s20, 3  ;;  %s211_s9 = int_to_ptr.hbm [resolvable:$true] %s210_s9 }
  0x1c   : > { %s231_s13 = scalar_lea.hbm %s4919_s2, %s2407_s29  ;;  %p2952_p11 = por %p81_p8, %p80_p7 }
  0x1d   : > { %s232_s14 = sshll.u32 %s231_s13, 4  ;;  %p2956_p12 = pnand %p2350_p9, %p169_p10  ;;  %s233_s14 = int_to_ptr.hbm [resolvable:$true] %s232_s14 }
  0x1e   : > { %2432 = dma.hbm_to_vmem [thread:$0]  (!%p2931_p6), %s211_s9, 8192, %s213_s8, %s201_s22, %s2839_s24, %s2840_s30, %s2841_s5  }
  0x1f   : > { %s4922_s0 = sld [smem:[#allocation42_spill]]  ;;  %p2425_p13 = pneg %p2956_p12 }
  0x20   : > { %s2842_s8 = smov [#allocation3]   ;;  %s226_s11 = scalar_lea.vmem [#allocation8], %s2922_s28 }
  0x21   : > { %s186_s9 = sshll.u32 %s2842_s8, 4  ;;  %p2426_p0 = pnand %p2425_p13, %p81_p8  ;;  %s187_s9 = int_to_ptr.vmem [resolvable:$true] %s186_s9 }
  0x22   : > { %s234_s12 = sshll.u32 %s226_s11, 4  ;;  %s2410_s13 = sshll.u32 %s2833_s19, 9  ;;  %s235_s12 = int_to_ptr.vmem [resolvable:$true] %s234_s12 }
  0x23   : > { %2435 = dma.hbm_to_vmem [thread:$0]  (!%p2931_p6), %s233_s14, 8192, %s235_s12, %s201_s22, %s2839_s24, %s2840_s30, %s2841_s5  }
  0x24   : > { %s248_s6 = scalar_lea.vmem [#allocation9], %s2922_s28  ;;  %s4923_s11 = sand.u32 1, %s2825_s17  }
  0x25   : > { %s184_s15 = sshll.u32 %s4922_s0, 4  ;;  %s257_s7 = sshll.u32 %s248_s6, 4  ;;  %s185_s15 = int_to_ptr.hbm [resolvable:$true] %s184_s15  ;;  %s258_s7 = int_to_ptr.vmem [resolvable:$true] %s257_s7 }
  0x26   : > { %2428 = dma.hbm_to_vmem [thread:$0]  (!%p2426_p0), %s185_s15, 4096, %s187_s9, [#allocation4], %s2840_s30, %s2840_s30, %s2841_s5  }
  0x27   : > { %s254_s0 = scalar_lea.hbm %s4906_s3, %s2410_s13  ;;  %s245_s2 = scalar_lea.sflag [#allocation10], %s4923_s11 }
  0x28   : > { %s255_s1 = sshll.u32 %s254_s0, 4  ;;  %269 = sbr.rel (%p2956_p12) target bundleno = 739 (0x2e3), region = 36  ;;  %s256_s1 = int_to_ptr.hbm [resolvable:$true] %s255_s1 }
  0x29   : > { %2438 = dma.hbm_to_vmem [thread:$0]  (!%p2931_p6), %s256_s1, 8192, %s258_s7, %s245_s2, %s2840_s30, %s2840_s30, %s2841_s5  }
  0x2d   : > { %2800 = dma.done.wait (%p81_p8), [#allocation4], 4096  }
  0x2e   : > { %2802 = vsyncadd (%p81_p8), [#allocation4], 4294963200  ;;  %s276_s0 = sand.u32 1, %s2943_s23   ;;  %s278_s26 = sand.u32 1, %s2821_s16  }
  0x2f   : > { %s2365_s28 = sshll.u32 %s278_s26, 9  ;;  %s277_s10 = scalar_lea.sflag [#allocation7], %s276_s0 }
  0x30   : > { %s2995_s14 = scalar_lea.vmem [#allocation6], %s2365_s28 }
  0x31   : > { %2804 = dma.done.wait (%p2952_p11), %s277_s10, 16384  }
  0x32   : > { %2806 = vsyncadd (%p2952_p11), %s277_s10, 4294950912  ;;  %s3001_s1 = scalar_lea.vmem [#allocation8], %s2365_s28  ;;  %s297_s2 = scalar_lea.sflag [#allocation10], %s278_s26 }
  0x33   : > { %s3003_s22 = scalar_lea.vmem [#allocation9], %s2365_s28 }
  0x34   : > { %2808 = dma.done.wait (%p2952_p11), %s297_s2, 8192  }
  0x35   : > { %2810 = vsyncadd (%p2952_p11), %s297_s2, 4294959104  ;;  %v398_v0 = vld [vmem:[%s2995_s14 + $0xf0] sm:$0xff]  ;;  %v399_v2 = vld [vmem:[%s2995_s14 + $0xf8] sm:$0xff]  ;;  %p2400_p1 = scmp.ne.s32.totalorder %s2829_s18, 0 }
  0x36   : > { %v430_v1 = vld [vmem:[%s2995_s14 + $0x1f0] sm:$0xff]  ;;  %432 = vmatpush.msra.mxu0 %v398_v0  ;;  %v431_v3 = vld [vmem:[%s2995_s14 + $0x1f8] sm:$0xff]  ;;  %v396_v4 = vld [vmem:[%s2995_s14 + $0xe0] sm:$0xff]  ;;  %562 = vmatpush.msra.mxu2 %v399_v2 }
  0x37   : > { %497 = vmatpush.msra.mxu1 %v430_v1  ;;  %v428_v5 = vld [vmem:[%s2995_s14 + $0x1e0] sm:$0xff]  ;;  %627 = vmatpush.msra.mxu3 %v431_v3  ;;  %v397_v6 = vld [vmem:[%s2995_s14 + $0xe8] sm:$0xff]  ;;  %v394_v8 = vld [vmem:[%s2995_s14 + $0xd0] sm:$0xff] }
  0x38   : > { %v429_v7 = vld [vmem:[%s2995_s14 + $0x1e8] sm:$0xff]  ;;  %433 = vmatpush.msra.mxu0 %v396_v4  ;;  %v426_v9 = vld [vmem:[%s2995_s14 + $0x1d0] sm:$0xff]  ;;  %v395_v10 = vld [vmem:[%s2995_s14 + $0xd8] sm:$0xff]  ;;  %563 = vmatpush.msra.mxu2 %v397_v6 }
  0x39   : > { %498 = vmatpush.msra.mxu1 %v428_v5  ;;  %v427_v11 = vld [vmem:[%s2995_s14 + $0x1d8] sm:$0xff]  ;;  %628 = vmatpush.msra.mxu3 %v429_v7  ;;  %v392_v12 = vld [vmem:[%s2995_s14 + $0xc0] sm:$0xff]  ;;  %v393_v14 = vld [vmem:[%s2995_s14 + $0xc8] sm:$0xff] }
  0x3a   : > { %v424_v13 = vld [vmem:[%s2995_s14 + $0x1c0] sm:$0xff]  ;;  %434 = vmatpush.msra.mxu0 %v394_v8  ;;  %v425_v15 = vld [vmem:[%s2995_s14 + $0x1c8] sm:$0xff]  ;;  %564 = vmatpush.msra.mxu2 %v395_v10  ;;  %v390_v16 = vld [vmem:[%s2995_s14 + $0xb0] sm:$0xff] }
  0x3b   : > { %499 = vmatpush.msra.mxu1 %v426_v9  ;;  %629 = vmatpush.msra.mxu3 %v427_v11  ;;  %v422_v17 = vld [vmem:[%s2995_s14 + $0x1b0] sm:$0xff]  ;;  %v391_v18 = vld [vmem:[%s2995_s14 + $0xb8] sm:$0xff]  ;;  %v388_v20 = vld [vmem:[%s2995_s14 + $0xa0] sm:$0xff] }
  0x3c   : > { %435 = vmatpush.msra.mxu0 %v392_v12  ;;  %v423_v19 = vld [vmem:[%s2995_s14 + $0x1b8] sm:$0xff]  ;;  %565 = vmatpush.msra.mxu2 %v393_v14  ;;  %v420_v21 = vld [vmem:[%s2995_s14 + $0x1a0] sm:$0xff]  ;;  %v389_v22 = vld [vmem:[%s2995_s14 + $0xa8] sm:$0xff] }
  0x3d   : > { %500 = vmatpush.msra.mxu1 %v424_v13  ;;  %630 = vmatpush.msra.mxu3 %v425_v15  ;;  %v421_v23 = vld [vmem:[%s2995_s14 + $0x1a8] sm:$0xff]  ;;  %v386_v24 = vld [vmem:[%s2995_s14 + $0x90] sm:$0xff]  ;;  %v387_v26 = vld [vmem:[%s2995_s14 + $0x98] sm:$0xff] }
  0x3e   : > { %436 = vmatpush.msra.mxu0 %v390_v16  ;;  %566 = vmatpush.msra.mxu2 %v391_v18  ;;  %v418_v25 = vld [vmem:[%s2995_s14 + $0x190] sm:$0xff]  ;;  %v419_v27 = vld [vmem:[%s2995_s14 + $0x198] sm:$0xff]  ;;  %v384_v28 = vld [vmem:[%s2995_s14 + $0x80] sm:$0xff] }
  0x3f   : > { %501 = vmatpush.msra.mxu1 %v422_v17  ;;  %631 = vmatpush.msra.mxu3 %v423_v19  ;;  %v416_v29 = vld [vmem:[%s2995_s14 + $0x180] sm:$0xff]  ;;  %v385_v30 = vld [vmem:[%s2995_s14 + $0x88] sm:$0xff]  ;;  %v382_v32 = vld [vmem:[%s2995_s14 + $0x70] sm:$0xff] }
  0x40   : > { %437 = vmatpush.msra.mxu0 %v388_v20  ;;  %567 = vmatpush.msra.mxu2 %v389_v22  ;;  %v417_v31 = vld [vmem:[%s2995_s14 + $0x188] sm:$0xff]  ;;  %v414_v33 = vld [vmem:[%s2995_s14 + $0x170] sm:$0xff]  ;;  %v383_v34 = vld [vmem:[%s2995_s14 + $0x78] sm:$0xff] }
  0x41   : > { %502 = vmatpush.msra.mxu1 %v420_v21  ;;  %632 = vmatpush.msra.mxu3 %v421_v23  ;;  %v415_v35 = vld [vmem:[%s2995_s14 + $0x178] sm:$0xff]  ;;  %v380_v36 = vld [vmem:[%s2995_s14 + $0x60] sm:$0xff]  ;;  %v381_v38 = vld [vmem:[%s2995_s14 + $0x68] sm:$0xff] }
  0x42   : > { %438 = vmatpush.msra.mxu0 %v386_v24  ;;  %568 = vmatpush.msra.mxu2 %v387_v26  ;;  %v412_v37 = vld [vmem:[%s2995_s14 + $0x160] sm:$0xff]  ;;  %v413_v39 = vld [vmem:[%s2995_s14 + $0x168] sm:$0xff]  ;;  %v378_v40 = vld [vmem:[%s2995_s14 + $0x50] sm:$0xff] }
  0x43   : > { %503 = vmatpush.msra.mxu1 %v418_v25  ;;  %633 = vmatpush.msra.mxu3 %v419_v27  ;;  %v410_v41 = vld [vmem:[%s2995_s14 + $0x150] sm:$0xff]  ;;  %v379_v42 = vld [vmem:[%s2995_s14 + $0x58] sm:$0xff]  ;;  %v376_v44 = vld [vmem:[%s2995_s14 + $0x40] sm:$0xff] }
  0x44   : > { %439 = vmatpush.msra.mxu0 %v384_v28  ;;  %569 = vmatpush.msra.mxu2 %v385_v30  ;;  %v411_v43 = vld [vmem:[%s2995_s14 + $0x158] sm:$0xff]  ;;  %v408_v45 = vld [vmem:[%s2995_s14 + $0x140] sm:$0xff]  ;;  %v377_v46 = vld [vmem:[%s2995_s14 + $0x48] sm:$0xff] }
  0x45   : > { %504 = vmatpush.msra.mxu1 %v416_v29  ;;  %634 = vmatpush.msra.mxu3 %v417_v31  ;;  %v409_v47 = vld [vmem:[%s2995_s14 + $0x148] sm:$0xff]  ;;  %v374_v48 = vld [vmem:[%s2995_s14 + $0x30] sm:$0xff]  ;;  %v375_v50 = vld [vmem:[%s2995_s14 + $0x38] sm:$0xff] }
  0x46   : > { %440 = vmatpush.msra.mxu0 %v382_v32  ;;  %570 = vmatpush.msra.mxu2 %v383_v34  ;;  %v406_v49 = vld [vmem:[%s2995_s14 + $0x130] sm:$0xff]  ;;  %v407_v51 = vld [vmem:[%s2995_s14 + $0x138] sm:$0xff]  ;;  %v372_v52 = vld [vmem:[%s2995_s14 + $0x20] sm:$0xff] }
  0x47   : > { %505 = vmatpush.msra.mxu1 %v414_v33  ;;  %635 = vmatpush.msra.mxu3 %v415_v35  ;;  %v404_v53 = vld [vmem:[%s2995_s14 + $0x120] sm:$0xff]  ;;  %v373_v54 = vld [vmem:[%s2995_s14 + $0x28] sm:$0xff]  ;;  %v370_v56 = vld [vmem:[%s2995_s14 + $0x10] sm:$0xff] }
  0x48   : > { %441 = vmatpush.msra.mxu0 %v380_v36  ;;  %571 = vmatpush.msra.mxu2 %v381_v38  ;;  %v405_v55 = vld [vmem:[%s2995_s14 + $0x128] sm:$0xff]  ;;  %v402_v57 = vld [vmem:[%s2995_s14 + $0x110] sm:$0xff]  ;;  %v371_v58 = vld [vmem:[%s2995_s14 + $0x18] sm:$0xff] }
  0x49   : > { %506 = vmatpush.msra.mxu1 %v412_v37  ;;  %636 = vmatpush.msra.mxu3 %v413_v39  ;;  %v403_v59 = vld [vmem:[%s2995_s14 + $0x118] sm:$0xff]  ;;  %v368_v60 = vld [vmem:[%s2995_s14] sm:$0xff]  ;;  %v369_v62 = vld [vmem:[%s2995_s14 + $0x8] sm:$0xff] }
  0x4a   : > { %442 = vmatpush.msra.mxu0 %v378_v40  ;;  %572 = vmatpush.msra.mxu2 %v379_v42  ;;  %v400_v61 = vld [vmem:[%s2995_s14 + $0x100] sm:$0xff]  ;;  %v401_v63 = vld [vmem:[%s2995_s14 + $0x108] sm:$0xff]  ;;  %v723_v2 = vld [vmem:[%s3001_s1 + $0xf8] sm:$0xff] }
  0x4b   : > { %507 = vmatpush.msra.mxu1 %v410_v41  ;;  %637 = vmatpush.msra.mxu3 %v411_v43  ;;  %v3073_v0 = vld [vmem:[#allocation3] sm:$0xff]  ;;  %v3075_v1 = vld [vmem:[#allocation3 + $0x8] sm:$0xff]  ;;  %v755_v3 = vld [vmem:[%s3001_s1 + $0x1f8] sm:$0xff] }
  0x4c   : > { %443 = vmatpush.msra.mxu0 %v376_v44  ;;  %573 = vmatpush.msra.mxu2 %v377_v46  ;;  %v722_v4 = vld [vmem:[%s3001_s1 + $0xf0] sm:$0xff]  ;;  %v721_v6 = vld [vmem:[%s3001_s1 + $0xe8] sm:$0xff]  ;;  %v720_v8 = vld [vmem:[%s3001_s1 + $0xe0] sm:$0xff] }
  0x4d   : > { %508 = vmatpush.msra.mxu1 %v408_v45  ;;  %638 = vmatpush.msra.mxu3 %v409_v47  ;;  %v754_v5 = vld [vmem:[%s3001_s1 + $0x1f0] sm:$0xff]  ;;  %v753_v7 = vld [vmem:[%s3001_s1 + $0x1e8] sm:$0xff]  ;;  %v752_v9 = vld [vmem:[%s3001_s1 + $0x1e0] sm:$0xff] }
  0x4e   : > { %444 = vmatpush.msra.mxu0 %v374_v48  ;;  %574 = vmatpush.msra.mxu2 %v375_v50  ;;  %v719_v10 = vld [vmem:[%s3001_s1 + $0xd8] sm:$0xff]  ;;  %v718_v12 = vld [vmem:[%s3001_s1 + $0xd0] sm:$0xff]  ;;  %v717_v16 = vld [vmem:[%s3001_s1 + $0xc8] sm:$0xff] }
  0x4f   : > { %509 = vmatpush.msra.mxu1 %v406_v49  ;;  %639 = vmatpush.msra.mxu3 %v407_v51  ;;  %v751_v11 = vld [vmem:[%s3001_s1 + $0x1d8] sm:$0xff]  ;;  %v750_v13 = vld [vmem:[%s3001_s1 + $0x1d0] sm:$0xff]  ;;  %v749_v17 = vld [vmem:[%s3001_s1 + $0x1c8] sm:$0xff] }
  0x50   : > { %445 = vmatpush.msra.mxu0 %v372_v52  ;;  %575 = vmatpush.msra.mxu2 %v373_v54  ;;  %v3093_v14 = vld [vmem:[#allocation3 + $0x10] sm:$0xff]  ;;  %v3095_v15 = vld [vmem:[#allocation3 + $0x18] sm:$0xff]  ;;  %v716_v18 = vld [vmem:[%s3001_s1 + $0xc0] sm:$0xff] }
  0x51   : > { %510 = vmatpush.msra.mxu1 %v404_v53  ;;  %640 = vmatpush.msra.mxu3 %v405_v55  ;;  %v748_v19 = vld [vmem:[%s3001_s1 + $0x1c0] sm:$0xff]  ;;  %v715_v20 = vld [vmem:[%s3001_s1 + $0xb8] sm:$0xff]  ;;  %v714_v22 = vld [vmem:[%s3001_s1 + $0xb0] sm:$0xff] }
  0x52   : > { %446 = vmatpush.msra.mxu0 %v370_v56  ;;  %576 = vmatpush.msra.mxu2 %v371_v58  ;;  %v747_v21 = vld [vmem:[%s3001_s1 + $0x1b8] sm:$0xff]  ;;  %v746_v23 = vld [vmem:[%s3001_s1 + $0x1b0] sm:$0xff]  ;;  %v713_v24 = vld [vmem:[%s3001_s1 + $0xa8] sm:$0xff] }
  0x53   : > { %511 = vmatpush.msra.mxu1 %v402_v57  ;;  %641 = vmatpush.msra.mxu3 %v403_v59  ;;  %v745_v25 = vld [vmem:[%s3001_s1 + $0x1a8] sm:$0xff]  ;;  %v712_v26 = vld [vmem:[%s3001_s1 + $0xa0] sm:$0xff]  ;;  %v711_v30 = vld [vmem:[%s3001_s1 + $0x98] sm:$0xff] }
  0x54   : > { %447 = vmatpush.msra.mxu0 %v368_v60  ;;  %577 = vmatpush.msra.mxu2 %v369_v62  ;;  %v744_v27 = vld [vmem:[%s3001_s1 + $0x1a0] sm:$0xff]  ;;  %v3115_v29 = vld [vmem:[#allocation3 + $0x28] sm:$0xff]  ;;  %v743_v31 = vld [vmem:[%s3001_s1 + $0x198] sm:$0xff] }
  0x55   : > { %512 = vmatpush.msra.mxu1 %v400_v61  ;;  %642 = vmatpush.msra.mxu3 %v401_v63  ;;  %v3113_v28 = vld [vmem:[#allocation3 + $0x20] sm:$0xff]  ;;  %v710_v32 = vld [vmem:[%s3001_s1 + $0x90] sm:$0xff]  ;;  %v3127_v35 = vld [vmem:[#allocation3 + $0x38] sm:$0xff] }
  0x56   : > { %448 = vmatmul.f32.vlgmr.msra.gmra.mxu0 %v3073_v0  ;;  %513 = vmatmul.f32.vlgmr.msra.gmra.mxu1 %v3075_v1  ;;  %v742_v33 = vld [vmem:[%s3001_s1 + $0x190] sm:$0xff]  ;;  %v709_v36 = vld [vmem:[%s3001_s1 + $0x88] sm:$0xff]  ;;  %v708_v38 = vld [vmem:[%s3001_s1 + $0x80] sm:$0xff] }
  0x57   : > { %578 = vmatmul.f32.vlgmr.msra.gmra.mxu2 %v3073_v0  ;;  %643 = vmatmul.f32.vlgmr.msra.gmra.mxu3 %v3075_v1  ;;  %v3125_v34 = vld [vmem:[#allocation3 + $0x30] sm:$0xff]  ;;  %v741_v37 = vld [vmem:[%s3001_s1 + $0x188] sm:$0xff]  ;;  %v740_v39 = vld [vmem:[%s3001_s1 + $0x180] sm:$0xff] }
  0x58   : > { %886 = vmatpush.msrb.mxu2 %v723_v2  ;;  %951 = vmatpush.msrb.mxu3 %v755_v3  ;;  %v3137_v40 = vld [vmem:[#allocation3 + $0x40] sm:$0xff]  ;;  %v3139_v41 = vld [vmem:[#allocation3 + $0x48] sm:$0xff]  ;;  %v707_v42 = vld [vmem:[%s3001_s1 + $0x78] sm:$0xff] }
  0x59   : > { %756 = vmatpush.msrb.mxu0 %v722_v4  ;;  %821 = vmatpush.msrb.mxu1 %v754_v5  ;;  %v739_v43 = vld [vmem:[%s3001_s1 + $0x178] sm:$0xff]  ;;  %v706_v44 = vld [vmem:[%s3001_s1 + $0x70] sm:$0xff]  ;;  %v705_v48 = vld [vmem:[%s3001_s1 + $0x68] sm:$0xff] }
  0x5a   : > { %887 = vmatpush.msrb.mxu2 %v721_v6  ;;  %952 = vmatpush.msrb.mxu3 %v753_v7  ;;  %v738_v45 = vld [vmem:[%s3001_s1 + $0x170] sm:$0xff]  ;;  %v3151_v47 = vld [vmem:[#allocation3 + $0x58] sm:$0xff]  ;;  %v737_v49 = vld [vmem:[%s3001_s1 + $0x168] sm:$0xff] }
  0x5b   : > { %757 = vmatpush.msrb.mxu0 %v720_v8  ;;  %822 = vmatpush.msrb.mxu1 %v752_v9  ;;  %v3149_v46 = vld [vmem:[#allocation3 + $0x50] sm:$0xff]  ;;  %v704_v50 = vld [vmem:[%s3001_s1 + $0x60] sm:$0xff]  ;;  %v3163_v53 = vld [vmem:[#allocation3 + $0x68] sm:$0xff] }
  0x5c   : > { %888 = vmatpush.msrb.mxu2 %v719_v10  ;;  %953 = vmatpush.msrb.mxu3 %v751_v11  ;;  %v736_v51 = vld [vmem:[%s3001_s1 + $0x160] sm:$0xff]  ;;  %v703_v54 = vld [vmem:[%s3001_s1 + $0x58] sm:$0xff]  ;;  %v702_v56 = vld [vmem:[%s3001_s1 + $0x50] sm:$0xff] }
  0x5d   : > { %758 = vmatpush.msrb.mxu0 %v718_v12  ;;  %823 = vmatpush.msrb.mxu1 %v750_v13  ;;  %v3161_v52 = vld [vmem:[#allocation3 + $0x60] sm:$0xff]  ;;  %v735_v55 = vld [vmem:[%s3001_s1 + $0x158] sm:$0xff]  ;;  %v734_v57 = vld [vmem:[%s3001_s1 + $0x150] sm:$0xff] }
  0x5e   : > { %451 = vmatmul.f32.gmra.mxu0 %v3093_v14  ;;  %516 = vmatmul.f32.gmra.mxu1 %v3095_v15  ;;  %v3173_v58 = vld [vmem:[#allocation3 + $0x70] sm:$0xff]  ;;  %v3175_v59 = vld [vmem:[#allocation3 + $0x78] sm:$0xff]  ;;  %v701_v60 = vld [vmem:[%s3001_s1 + $0x48] sm:$0xff] }
  0x5f   : > { %581 = vmatmul.f32.gmra.mxu2 %v3093_v14  ;;  %646 = vmatmul.f32.gmra.mxu3 %v3095_v15  ;;  %v733_v61 = vld [vmem:[%s3001_s1 + $0x148] sm:$0xff]  ;;  %v700_v62 = vld [vmem:[%s3001_s1 + $0x40] sm:$0xff]  ;;  %v699_v4 = vld [vmem:[%s3001_s1 + $0x38] sm:$0xff] }
  0x60   : > { %889 = vmatpush.msrb.mxu2 %v717_v16  ;;  %954 = vmatpush.msrb.mxu3 %v749_v17  ;;  %v732_v63 = vld [vmem:[%s3001_s1 + $0x140] sm:$0xff]  ;;  %v3187_v3 = vld [vmem:[#allocation3 + $0x88] sm:$0xff]  ;;  %v731_v5 = vld [vmem:[%s3001_s1 + $0x138] sm:$0xff] }
  0x61   : > { %759 = vmatpush.msrb.mxu0 %v716_v18  ;;  %824 = vmatpush.msrb.mxu1 %v748_v19  ;;  %v3185_v2 = vld [vmem:[#allocation3 + $0x80] sm:$0xff]  ;;  %v698_v6 = vld [vmem:[%s3001_s1 + $0x30] sm:$0xff]  ;;  %v3199_v9 = vld [vmem:[#allocation3 + $0x98] sm:$0xff] }
  0x62   : > { %890 = vmatpush.msrb.mxu2 %v715_v20  ;;  %955 = vmatpush.msrb.mxu3 %v747_v21  ;;  %v730_v7 = vld [vmem:[%s3001_s1 + $0x130] sm:$0xff]  ;;  %v697_v10 = vld [vmem:[%s3001_s1 + $0x28] sm:$0xff]  ;;  %v696_v12 = vld [vmem:[%s3001_s1 + $0x20] sm:$0xff] }
  0x63   : > { %760 = vmatpush.msrb.mxu0 %v714_v22  ;;  %825 = vmatpush.msrb.mxu1 %v746_v23  ;;  %v3197_v8 = vld [vmem:[#allocation3 + $0x90] sm:$0xff]  ;;  %v729_v11 = vld [vmem:[%s3001_s1 + $0x128] sm:$0xff]  ;;  %v728_v13 = vld [vmem:[%s3001_s1 + $0x120] sm:$0xff] }
  0x64   : > { %891 = vmatpush.msrb.mxu2 %v713_v24  ;;  %956 = vmatpush.msrb.mxu3 %v745_v25  ;;  %v3209_v16 = vld [vmem:[#allocation3 + $0xa0] sm:$0xff]  ;;  %v3211_v17 = vld [vmem:[#allocation3 + $0xa8] sm:$0xff]  ;;  %v695_v18 = vld [vmem:[%s3001_s1 + $0x18] sm:$0xff] }
  0x65   : > { %761 = vmatpush.msrb.mxu0 %v712_v26  ;;  %826 = vmatpush.msrb.mxu1 %v744_v27  ;;  %v727_v19 = vld [vmem:[%s3001_s1 + $0x118] sm:$0xff]  ;;  %v694_v20 = vld [vmem:[%s3001_s1 + $0x10] sm:$0xff]  ;;  %v693_v24 = vld [vmem:[%s3001_s1 + $0x8] sm:$0xff] }
  0x66   : > { %454 = vmatmul.f32.gmra.mxu0 %v3113_v28  ;;  %519 = vmatmul.f32.gmra.mxu1 %v3115_v29  ;;  %v726_v21 = vld [vmem:[%s3001_s1 + $0x110] sm:$0xff]  ;;  %v3223_v23 = vld [vmem:[#allocation3 + $0xb8] sm:$0xff]  ;;  %v725_v25 = vld [vmem:[%s3001_s1 + $0x108] sm:$0xff] }
  0x67   : > { %584 = vmatmul.f32.gmra.mxu2 %v3113_v28  ;;  %649 = vmatmul.f32.gmra.mxu3 %v3115_v29  ;;  %v3221_v22 = vld [vmem:[#allocation3 + $0xb0] sm:$0xff]  ;;  %v3231_v26 = vld [vmem:[#allocation3 + $0xc0] sm:$0xff]  ;;  %v3233_v27 = vld [vmem:[#allocation3 + $0xc8] sm:$0xff] }
  0x68   : > { %892 = vmatpush.msrb.mxu2 %v711_v30  ;;  %957 = vmatpush.msrb.mxu3 %v743_v31  ;;  %v692_v30 = vld [vmem:[%s3001_s1] sm:$0xff] }
  0x69   : > { %762 = vmatpush.msrb.mxu0 %v710_v32  ;;  %827 = vmatpush.msrb.mxu1 %v742_v33  ;;  %v724_v31 = vld [vmem:[%s3001_s1 + $0x100] sm:$0xff]  ;;  %v3241_v32 = vld [vmem:[#allocation3 + $0xd0] sm:$0xff]  ;;  %v3243_v33 = vld [vmem:[#allocation3 + $0xd8] sm:$0xff] }
  0x6a   : > { %893 = vmatpush.msrb.mxu2 %v709_v36  ;;  %958 = vmatpush.msrb.mxu3 %v741_v37  ;;  %v3249_v36 = vld [vmem:[#allocation3 + $0xe0] sm:$0xff]  ;;  %v3251_v37 = vld [vmem:[#allocation3 + $0xe8] sm:$0xff] }
  0x6b   : > { %763 = vmatpush.msrb.mxu0 %v708_v38  ;;  %828 = vmatpush.msrb.mxu1 %v740_v39  ;;  %v3257_v38 = vld [vmem:[#allocation3 + $0xf0] sm:$0xff]  ;;  %v3259_v39 = vld [vmem:[#allocation3 + $0xf8] sm:$0xff] }
  0x6c   : > { %894 = vmatpush.msrb.mxu2 %v707_v42  ;;  %959 = vmatpush.msrb.mxu3 %v739_v43 }
  0x6d   : > { %764 = vmatpush.msrb.mxu0 %v706_v44  ;;  %829 = vmatpush.msrb.mxu1 %v738_v45 }
  0x6e   : > { %457 = vmatmul.f32.gmra.mxu0 %v3125_v34  ;;  %522 = vmatmul.f32.gmra.mxu1 %v3127_v35 }
  0x6f   : > { %587 = vmatmul.f32.gmra.mxu2 %v3125_v34  ;;  %652 = vmatmul.f32.gmra.mxu3 %v3127_v35 }
  0x70   : > { %895 = vmatpush.msrb.mxu2 %v705_v48  ;;  %960 = vmatpush.msrb.mxu3 %v737_v49  ;;  %v1719_v48 = vld [vmem:[%s3003_s22 + $0xf8] sm:$0xff] }
  0x71   : > { %765 = vmatpush.msrb.mxu0 %v704_v50  ;;  %830 = vmatpush.msrb.mxu1 %v736_v51  ;;  %v1751_v49 = vld [vmem:[%s3003_s22 + $0x1f8] sm:$0xff] }
  0x72   : > { %896 = vmatpush.msrb.mxu2 %v703_v54  ;;  %961 = vmatpush.msrb.mxu3 %v735_v55 }
  0x73   : > { %766 = vmatpush.msrb.mxu0 %v702_v56  ;;  %831 = vmatpush.msrb.mxu1 %v734_v57 }
  0x74   : > { %897 = vmatpush.msrb.mxu2 %v701_v60  ;;  %962 = vmatpush.msrb.mxu3 %v733_v61  ;;  %v1718_v60 = vld [vmem:[%s3003_s22 + $0xf0] sm:$0xff] }
  0x75   : > { %767 = vmatpush.msrb.mxu0 %v700_v62  ;;  %832 = vmatpush.msrb.mxu1 %v732_v63  ;;  %v1750_v61 = vld [vmem:[%s3003_s22 + $0x1f0] sm:$0xff]  ;;  %v1717_v62 = vld [vmem:[%s3003_s22 + $0xe8] sm:$0xff] }
  0x76   : > { %460 = vmatmul.f32.gmra.mxu0 %v3137_v40  ;;  %525 = vmatmul.f32.gmra.mxu1 %v3139_v41  ;;  %v1749_v63 = vld [vmem:[%s3003_s22 + $0x1e8] sm:$0xff] }
  0x77   : > { %590 = vmatmul.f32.gmra.mxu2 %v3137_v40  ;;  %655 = vmatmul.f32.gmra.mxu3 %v3139_v41 }
  0x78   : > { %898 = vmatpush.msrb.mxu2 %v699_v4  ;;  %963 = vmatpush.msrb.mxu3 %v731_v5 }
  0x79   : > { %768 = vmatpush.msrb.mxu0 %v698_v6  ;;  %833 = vmatpush.msrb.mxu1 %v730_v7  ;;  %v1716_v7 = vld [vmem:[%s3003_s22 + $0xe0] sm:$0xff] }
  0x7a   : > { %899 = vmatpush.msrb.mxu2 %v697_v10  ;;  %964 = vmatpush.msrb.mxu3 %v729_v11  ;;  %v1748_v10 = vld [vmem:[%s3003_s22 + $0x1e0] sm:$0xff]  ;;  %v1715_v11 = vld [vmem:[%s3003_s22 + $0xd8] sm:$0xff] }
  0x7b   : > { %769 = vmatpush.msrb.mxu0 %v696_v12  ;;  %834 = vmatpush.msrb.mxu1 %v728_v13  ;;  %v1747_v12 = vld [vmem:[%s3003_s22 + $0x1d8] sm:$0xff] }
  0x7c   : > { %900 = vmatpush.msrb.mxu2 %v695_v18  ;;  %965 = vmatpush.msrb.mxu3 %v727_v19 }
  0x7d   : > { %770 = vmatpush.msrb.mxu0 %v694_v20  ;;  %835 = vmatpush.msrb.mxu1 %v726_v21 }
  0x7e   : > { %463 = vmatmul.f32.gmra.mxu0 %v3149_v46  ;;  %528 = vmatmul.f32.gmra.mxu1 %v3151_v47 }
  0x7f   : > { %593 = vmatmul.f32.gmra.mxu2 %v3149_v46  ;;  %658 = vmatmul.f32.gmra.mxu3 %v3151_v47 }
  0x80   : > { %901 = vmatpush.msrb.mxu2 %v693_v24  ;;  %966 = vmatpush.msrb.mxu3 %v725_v25  ;;  %v1713_v24 = vld [vmem:[%s3003_s22 + $0xc8] sm:$0xff] }
  0x81   : > { %771 = vmatpush.msrb.mxu0 %v692_v30  ;;  %836 = vmatpush.msrb.mxu1 %v724_v31  ;;  %v1745_v25 = vld [vmem:[%s3003_s22 + $0x1c8] sm:$0xff] }
  0x82   : > { %1882 = vmatpush.msra.mxu2 %v1719_v48  ;;  %1947 = vmatpush.msra.mxu3 %v1751_v49  ;;  %v1744_v48 = vld [vmem:[%s3003_s22 + $0x1c0] sm:$0xff]  ;;  %v1711_v49 = vld [vmem:[%s3003_s22 + $0xb8] sm:$0xff] }
  0x83   : > { %1752 = vmatpush.msra.mxu0 %v1718_v60  ;;  %1817 = vmatpush.msra.mxu1 %v1750_v61  ;;  %v1743_v60 = vld [vmem:[%s3003_s22 + $0x1b8] sm:$0xff]  ;;  %v1742_v61 = vld [vmem:[%s3003_s22 + $0x1b0] sm:$0xff] }
  0x84   : > { %1883 = vmatpush.msra.mxu2 %v1717_v62  ;;  %1948 = vmatpush.msra.mxu3 %v1749_v63  ;;  %v1709_v62 = vld [vmem:[%s3003_s22 + $0xa8] sm:$0xff] }
  0x85   : > { %1753 = vmatpush.msra.mxu0 %v1716_v7  ;;  %1818 = vmatpush.msra.mxu1 %v1748_v10 }
  0x86   : > { %466 = vmatmul.f32.gmra.mxu0 %v3161_v52  ;;  %531 = vmatmul.f32.gmra.mxu1 %v3163_v53 }
  0x87   : > { %596 = vmatmul.f32.gmra.mxu2 %v3161_v52  ;;  %661 = vmatmul.f32.gmra.mxu3 %v3163_v53 }
  0x88   : > { %1884 = vmatpush.msra.mxu2 %v1715_v11  ;;  %1949 = vmatpush.msra.mxu3 %v1747_v12 }
  0x8a   : > { %1885 = vmatpush.msra.mxu2 %v1713_v24  ;;  %1950 = vmatpush.msra.mxu3 %v1745_v25 }
  0x8c   : > { %1886 = vmatpush.msra.mxu2 %v1711_v49  ;;  %1951 = vmatpush.msra.mxu3 %v1743_v60 }
  0x8e   : > { %469 = vmatmul.f32.gmra.mxu0 %v3173_v58  ;;  %534 = vmatmul.f32.gmra.mxu1 %v3175_v59 }
  0x8f   : > { %599 = vmatmul.f32.gmra.mxu2 %v3173_v58  ;;  %664 = vmatmul.f32.gmra.mxu3 %v3175_v59 }
  0x90   : > { %1887 = vmatpush.msra.mxu2 %v1709_v62  ;;  %v1736_v62 = vld [vmem:[%s3003_s22 + $0x180] sm:$0xff] }
  0x96   : > { %472 = vmatmul.f32.gmra.mxu0 %v3185_v2  ;;  %537 = vmatmul.f32.gmra.mxu1 %v3187_v3 }
  0x97   : > { %602 = vmatmul.f32.gmra.mxu2 %v3185_v2  ;;  %667 = vmatmul.f32.gmra.mxu3 %v3187_v3 }
  0x9e   : > { %475 = vmatmul.f32.gmra.mxu0 %v3197_v8  ;;  %540 = vmatmul.f32.gmra.mxu1 %v3199_v9 }
  0x9f   : > { %605 = vmatmul.f32.gmra.mxu2 %v3197_v8  ;;  %670 = vmatmul.f32.gmra.mxu3 %v3199_v9 }
  0xa6   : > { %478 = vmatmul.f32.gmra.mxu0 %v3209_v16  ;;  %543 = vmatmul.f32.gmra.mxu1 %v3211_v17 }
  0xa7   : > { %608 = vmatmul.f32.gmra.mxu2 %v3209_v16  ;;  %673 = vmatmul.f32.gmra.mxu3 %v3211_v17 }
  0xae   : > { %481 = vmatmul.f32.gmra.mxu0 %v3221_v22  ;;  %546 = vmatmul.f32.gmra.mxu1 %v3223_v23 }
  0xaf   : > { %611 = vmatmul.f32.gmra.mxu2 %v3221_v22  ;;  %676 = vmatmul.f32.gmra.mxu3 %v3223_v23 }
  0xb6   : > { %484 = vmatmul.f32.gmra.mxu0 %v3231_v26  ;;  %549 = vmatmul.f32.gmra.mxu1 %v3233_v27 }
  0xb7   : > { %614 = vmatmul.f32.gmra.mxu2 %v3231_v26  ;;  %679 = vmatmul.f32.gmra.mxu3 %v3233_v27 }
  0xbe   : > { %487 = vmatmul.f32.gmra.mxu0 %v3241_v32  ;;  %552 = vmatmul.f32.gmra.mxu1 %v3243_v33 }
  0xbf   : > { %617 = vmatmul.f32.gmra.mxu2 %v3241_v32  ;;  %682 = vmatmul.f32.gmra.mxu3 %v3243_v33 }
  0xc6   : > { %490 = vmatmul.f32.gmra.mxu0 %v3249_v36  ;;  %555 = vmatmul.f32.gmra.mxu1 %v3251_v37 }
  0xc7   : > { %620 = vmatmul.f32.gmra.mxu2 %v3249_v36  ;;  %685 = vmatmul.f32.gmra.mxu3 %v3251_v37 }
  0xce   : > { %493 = vmatmul.f32.gmra.mxu0 %v3257_v38  ;;  %558 = vmatmul.f32.gmra.mxu1 %v3259_v39 }
  0xcf   : > { %623 = vmatmul.f32.gmra.mxu2 %v3257_v38  ;;  %688 = vmatmul.f32.gmra.mxu3 %v3259_v39 }
  0xd3   : > { %v3265_v42 = vpop.f32.mrf.mxu0  ;;  %v3267_v43 = vpop.f32.mrf.mxu1 }
  0xd6   : > { %772 = vmatmul.f32.vlgmr.msrb.gmra.mxu0 %v3073_v0  ;;  %837 = vmatmul.f32.vlgmr.msrb.gmra.mxu1 %v3075_v1 }
  0xd7   : > { %902 = vmatmul.f32.vlgmr.msrb.gmra.mxu2 %v3073_v0  ;;  %967 = vmatmul.f32.vlgmr.msrb.gmra.mxu3 %v3075_v1 }
  0xda   : > { %v579_v44 = vpop.f32.mrf.mxu2  ;;  %v644_v45 = vpop.f32.mrf.mxu3 }
  0xdb   : > { %v3275_v50 = vadd.f32 %v644_v45, %v579_v44  ;;  %v3277_v51 = vpop.f32.mrf.mxu0  ;;  %v3279_v54 = vpop.f32.mrf.mxu1  ;;  %v1712_v45 = vld [vmem:[%s3003_s22 + $0xc0] sm:$0xff] }
  0xde   : > { %775 = vmatmul.f32.gmra.mxu0 %v3093_v14  ;;  %840 = vmatmul.f32.gmra.mxu1 %v3095_v15 }
  0xdf   : > { %905 = vmatmul.f32.gmra.mxu2 %v3093_v14  ;;  %970 = vmatmul.f32.gmra.mxu3 %v3095_v15 }
  0xe2   : > { %v582_v0 = vpop.f32.mrf.mxu2  ;;  %v647_v1 = vpop.f32.mrf.mxu3 }
  0xe3   : > { %v3285_v55 = vadd.f32 %v647_v1, %v582_v0  ;;  %v3287_v56 = vpop.f32.mrf.mxu0  ;;  %v3289_v57 = vpop.f32.mrf.mxu1 }
  0xe6   : > { %778 = vmatmul.f32.gmra.mxu0 %v3113_v28  ;;  %843 = vmatmul.f32.gmra.mxu1 %v3115_v29 }
  0xe7   : > { %908 = vmatmul.f32.gmra.mxu2 %v3113_v28  ;;  %973 = vmatmul.f32.gmra.mxu3 %v3115_v29 }
  0xea   : > { %v585_v14 = vpop.f32.mrf.mxu2  ;;  %v650_v15 = vpop.f32.mrf.mxu3 }
  0xeb   : > { %v3299_v4 = vadd.f32 %v650_v15, %v585_v14  ;;  %v3301_v5 = vpop.f32.mrf.mxu0  ;;  %v3303_v6 = vpop.f32.mrf.mxu1  ;;  %v1741_v15 = vld [vmem:[%s3003_s22 + $0x1a8] sm:$0xff] }
  0xec   : > { %1952 = vmatpush.msra.mxu3 %v1741_v15 }
  0xee   : > { %781 = vmatmul.f32.gmra.mxu0 %v3125_v34  ;;  %846 = vmatmul.f32.gmra.mxu1 %v3127_v35 }
  0xef   : > { %911 = vmatmul.f32.gmra.mxu2 %v3125_v34  ;;  %976 = vmatmul.f32.gmra.mxu3 %v3127_v35  ;;  %v1714_v34 = vld [vmem:[%s3003_s22 + $0xd0] sm:$0xff] }
  0xf0   : > { %v1746_v35 = vld [vmem:[%s3003_s22 + $0x1d0] sm:$0xff]  ;;  %1754 = vmatpush.msra.mxu0 %v1714_v34  ;;  %v1708_v34 = vld [vmem:[%s3003_s22 + $0xa0] sm:$0xff] }
  0xf1   : > { %1819 = vmatpush.msra.mxu1 %v1746_v35  ;;  %v1707_v35 = vld [vmem:[%s3003_s22 + $0x98] sm:$0xff] }
  0xf2   : > { %v588_v28 = vpop.f32.mrf.mxu2  ;;  %v653_v29 = vpop.f32.mrf.mxu3  ;;  %1755 = vmatpush.msra.mxu0 %v1712_v45  ;;  %1888 = vmatpush.msra.mxu2 %v1707_v35  ;;  %v2369_v35 = vmul.f32 -1.442695, %v3275_v50 }
  0xf3   : > { %v3313_v13 = vadd.f32 %v653_v29, %v588_v28  ;;  %v3315_v18 = vpop.f32.mrf.mxu0  ;;  %v3317_v19 = vpop.f32.mrf.mxu1  ;;  %1820 = vmatpush.msra.mxu1 %v1744_v48 }
  0xf5   : > { %1821 = vmatpush.msra.mxu1 %v1742_v61  ;;  %v1704_v61 = vld [vmem:[%s3003_s22 + $0x80] sm:$0xff] }
  0xf6   : > { %784 = vmatmul.f32.gmra.mxu0 %v3137_v40  ;;  %849 = vmatmul.f32.gmra.mxu1 %v3139_v41 }
  0xf7   : > { %914 = vmatmul.f32.gmra.mxu2 %v3137_v40  ;;  %979 = vmatmul.f32.gmra.mxu3 %v3139_v41 }
  0xfa   : > { %v591_v20 = vpop.f32.mrf.mxu2  ;;  %v656_v21 = vpop.f32.mrf.mxu3 }
  0xfb   : > { %v3327_v30 = vpop.f32.mrf.mxu0  ;;  %v3329_v31 = vpop.f32.mrf.mxu1  ;;  %v3331_v40 = vadd.f32 %v656_v21, %v591_v20 }
  0xfd   : > { %4924 = vst [vmem:[#allocation16_spill] sm:$0xff] %v3331_v40 }
  0xfe   : > { %787 = vmatmul.f32.gmra.mxu0 %v3149_v46  ;;  %852 = vmatmul.f32.gmra.mxu1 %v3151_v47 }
  0xff   : > { %917 = vmatmul.f32.gmra.mxu2 %v3149_v46  ;;  %982 = vmatmul.f32.gmra.mxu3 %v3151_v47  ;;  %v1710_v47 = vld [vmem:[%s3003_s22 + $0xb0] sm:$0xff] }
 0x100   : > { %1756 = vmatpush.msra.mxu0 %v1710_v47  ;;  %v3405_v47 = vadd.f32 %v3267_v43, %v3265_v42 }
 0x102   : > { %v594_v41 = vpop.f32.mrf.mxu2  ;;  %v659_v44 = vpop.f32.mrf.mxu3  ;;  %1757 = vmatpush.msra.mxu0 %v1708_v34  ;;  %v1701_v34 = vld [vmem:[%s3003_s22 + $0x68] sm:$0xff] }
 0x103   : > { %v3340_v0 = vpop.f32.mrf.mxu0  ;;  %v3342_v1 = vpop.f32.mrf.mxu1  ;;  %v3345_v46 = vadd.f32 %v659_v44, %v594_v41  ;;  %v1706_v41 = vld [vmem:[%s3003_s22 + $0x90] sm:$0xff] }
 0x104   : > { %v1738_v44 = vld [vmem:[%s3003_s22 + $0x190] sm:$0xff]  ;;  %1758 = vmatpush.msra.mxu0 %v1706_v41 }
 0x105   : > { %4925 = vst [vmem:[#allocation17_spill] sm:$0xff] %v3345_v46 }
 0x106   : > { %790 = vmatmul.f32.gmra.mxu0 %v3161_v52  ;;  %855 = vmatmul.f32.gmra.mxu1 %v3163_v53 }
 0x107   : > { %920 = vmatmul.f32.gmra.mxu2 %v3161_v52  ;;  %985 = vmatmul.f32.gmra.mxu3 %v3163_v53 }
 0x108   : > { %1759 = vmatpush.msra.mxu0 %v1704_v61 }
 0x10a   : > { %v597_v63 = vpop.f32.mrf.mxu2  ;;  %v662_v14 = vpop.f32.mrf.mxu3 }
 0x10b   : > { %v3355_v7 = vpop.f32.mrf.mxu0  ;;  %v3357_v10 = vpop.f32.mrf.mxu1  ;;  %v3359_v52 = vadd.f32 %v662_v14, %v597_v63  ;;  %v1703_v63 = vld [vmem:[%s3003_s22 + $0x78] sm:$0xff] }
 0x10d   : > { %4926 = vst [vmem:[#allocation18_spill] sm:$0xff] %v3359_v52 }
 0x10e   : > { %793 = vmatmul.f32.gmra.mxu0 %v3173_v58  ;;  %858 = vmatmul.f32.gmra.mxu1 %v3175_v59 }
 0x10f   : > { %923 = vmatmul.f32.gmra.mxu2 %v3173_v58  ;;  %988 = vmatmul.f32.gmra.mxu3 %v3175_v59  ;;  %v1740_v58 = vld [vmem:[%s3003_s22 + $0x1a0] sm:$0xff]  ;;  %v1739_v59 = vld [vmem:[%s3003_s22 + $0x198] sm:$0xff] }
 0x110   : > { %1822 = vmatpush.msra.mxu1 %v1740_v58  ;;  %1953 = vmatpush.msra.mxu3 %v1739_v59  ;;  %v1733_v58 = vld [vmem:[%s3003_s22 + $0x168] sm:$0xff] }
 0x112   : > { %v600_v53 = vpop.f32.mrf.mxu2  ;;  %v665_v11 = vpop.f32.mrf.mxu3  ;;  %1823 = vmatpush.msra.mxu1 %v1738_v44 }
 0x113   : > { %v3365_v12 = vpop.f32.mrf.mxu0  ;;  %v3367_v28 = vpop.f32.mrf.mxu1  ;;  %v3369_v29 = vadd.f32 %v665_v11, %v600_v53  ;;  %v1702_v53 = vld [vmem:[%s3003_s22 + $0x70] sm:$0xff] }
 0x114   : > { %1824 = vmatpush.msra.mxu1 %v1736_v62  ;;  %v1734_v11 = vld [vmem:[%s3003_s22 + $0x170] sm:$0xff]  ;;  %1760 = vmatpush.msra.mxu0 %v1702_v53  ;;  %v1732_v62 = vld [vmem:[%s3003_s22 + $0x160] sm:$0xff] }
 0x116   : > { %796 = vmatmul.f32.gmra.mxu0 %v3185_v2  ;;  %861 = vmatmul.f32.gmra.mxu1 %v3187_v3 }
 0x117   : > { %926 = vmatmul.f32.gmra.mxu2 %v3185_v2  ;;  %991 = vmatmul.f32.gmra.mxu3 %v3187_v3  ;;  %v1705_v2 = vld [vmem:[%s3003_s22 + $0x88] sm:$0xff] }
 0x118   : > { %v1737_v3 = vld [vmem:[%s3003_s22 + $0x188] sm:$0xff]  ;;  %1889 = vmatpush.msra.mxu2 %v1705_v2  ;;  %1825 = vmatpush.msra.mxu1 %v1734_v11 }
 0x119   : > { %1954 = vmatpush.msra.mxu3 %v1737_v3  ;;  %v2371_v3 = vmul.f32 -1.442695, %v3285_v55 }
 0x11a   : > { %v3379_v20 = vpop.f32.mrf.mxu2  ;;  %v3381_v21 = vpop.f32.mrf.mxu3  ;;  %1890 = vmatpush.msra.mxu2 %v1703_v63  ;;  %v1699_v63 = vld [vmem:[%s3003_s22 + $0x58] sm:$0xff]  ;;  %1826 = vmatpush.msra.mxu1 %v1732_v62  ;;  %v1696_v62 = vld [vmem:[%s3003_s22 + $0x40] sm:$0xff] }
 0x11b   : > { %v3383_v24 = vpop.f32.mrf.mxu0  ;;  %v3385_v25 = vpop.f32.mrf.mxu1 }
 0x11c   : > { %1891 = vmatpush.msra.mxu2 %v1701_v34 }
 0x11e   : > { %799 = vmatmul.f32.gmra.mxu0 %v3197_v8  ;;  %864 = vmatmul.f32.gmra.mxu1 %v3199_v9 }
 0x11f   : > { %929 = vmatmul.f32.gmra.mxu2 %v3197_v8  ;;  %994 = vmatmul.f32.gmra.mxu3 %v3199_v9  ;;  %v1735_v8 = vld [vmem:[%s3003_s22 + $0x178] sm:$0xff]  ;;  %v2368_v9 = vmul.f32 -1.442695, %v3405_v47 }
 0x120   : > { %1955 = vmatpush.msra.mxu3 %v1735_v8  ;;  %1892 = vmatpush.msra.mxu2 %v1699_v63  ;;  %v1695_v63 = vld [vmem:[%s3003_s22 + $0x38] sm:$0xff] }
 0x121   : > { %2499 = vpow2.f32 %v2368_v9 }
 0x122   : > { %v3395_v45 = vpop.f32.mrf.mxu2  ;;  %v3397_v48 = vpop.f32.mrf.mxu3  ;;  %1956 = vmatpush.msra.mxu3 %v1733_v58  ;;  %2501 = vpow2.f32 %v2369_v35  ;;  %v3476_v58 = vadd.f32 %v3303_v6, %v3301_v5 }
 0x123   : > { %v3399_v49 = vpop.f32.mrf.mxu0  ;;  %v3401_v60 = vpop.f32.mrf.mxu1 }
 0x126   : > { %802 = vmatmul.f32.gmra.mxu0 %v3209_v16  ;;  %867 = vmatmul.f32.gmra.mxu1 %v3211_v17 }
 0x127   : > { %932 = vmatmul.f32.gmra.mxu2 %v3209_v16  ;;  %997 = vmatmul.f32.gmra.mxu3 %v3211_v17  ;;  %v3431_v16 = vadd.f32 %v3279_v54, %v3277_v51  ;;  %v2500_v54 = vpop.eup %2499 }
 0x128   : > { %v3446_v2 = vadd.f32 1.0, %v2500_v54  ;;  %v2502_v61 = vpop.eup %2501 }
 0x129   : > { %v2370_v17 = vmul.f32 -1.442695, %v3431_v16 }
 0x12a   : > { %v3416_v42 = vpop.f32.mrf.mxu2  ;;  %v3418_v43 = vpop.f32.mrf.mxu3  ;;  %vm1149_vm0 = vweird.f32 %v3446_v2 }
 0x12b   : > { %4927 = vst [vmem:[#allocation19_spill] sm:$0xff] %v3416_v42  ;;  %v3420_v14 = vpop.f32.mrf.mxu0  ;;  %v3422_v15 = vpop.f32.mrf.mxu1  ;;  %2503 = vpow2.f32 %v2370_v17  ;;  %v1698_v17 = vld [vmem:[%s3003_s22 + $0x50] sm:$0xff] }
 0x12c   : > { %4928 = vst [vmem:[#allocation20_spill] sm:$0xff] %v3418_v43  ;;  %2505 = vrcp.f32 %v3446_v2  ;;  %v3611_v43 = vadd.f32 %v3329_v31, %v3327_v30 }
 0x12d   : > { %4929 = vst [vmem:[#allocation21_spill] sm:$0xff] %v3420_v14  ;;  %2507 = vpow2.f32 %v2371_v3 }
 0x12e   : > { %4930 = vst [vmem:[#allocation22_spill] sm:$0xff] %v3422_v15  ;;  %805 = vmatmul.f32.gmra.mxu0 %v3221_v22  ;;  %870 = vmatmul.f32.gmra.mxu1 %v3223_v23 }
 0x12f   : > { %935 = vmatmul.f32.gmra.mxu2 %v3221_v22  ;;  %1000 = vmatmul.f32.gmra.mxu3 %v3223_v23  ;;  %v3451_v22 = vadd.f32 %v3289_v57, %v3287_v56  ;;  %v1700_v23 = vld [vmem:[%s3003_s22 + $0x60] sm:$0xff]  ;;  %v3465_v56 = vadd.f32 1.0, %v2502_v61  ;;  %v1731_v57 = vld [vmem:[%s3003_s22 + $0x158] sm:$0xff]  ;;  %v2374_v61 = vmul.f32 -1.442695, %v3476_v58  ;;  %4953 = vst [vmem:[#allocation41_spill] sm:$0xff] %v3611_v43 }
 0x130   : > { %1761 = vmatpush.msra.mxu0 %v1700_v23  ;;  %1957 = vmatpush.msra.mxu3 %v1731_v57  ;;  %v1697_v23 = vld [vmem:[%s3003_s22 + $0x48] sm:$0xff] }
 0x131   : > { %v2504_v34 = vpop.eup %2503  ;;  %2509 = vrcp.f32 %v3465_v56  ;;  %1893 = vmatpush.msra.mxu2 %v1697_v23  ;;  %vm1164_vm4 = vweird.f32 %v3465_v56 }
 0x132   : > { %v3438_v59 = vpop.f32.mrf.mxu2  ;;  %v3440_v51 = vpop.f32.mrf.mxu3  ;;  %v3479_v35 = vadd.f32 1.0, %v2504_v34  ;;  %1762 = vmatpush.msra.mxu0 %v1698_v17 }
 0x133   : > { %4931 = vst [vmem:[#allocation23_spill] sm:$0xff] %v3438_v59  ;;  %v3442_v41 = vpop.f32.mrf.mxu0  ;;  %v3444_v44 = vpop.f32.mrf.mxu1  ;;  %1894 = vmatpush.msra.mxu2 %v1695_v63  ;;  %v2375_v63 = vmul.f32 -1.442695, %v3313_v13 }
 0x134   : > { %4932 = vst [vmem:[#allocation24_spill] sm:$0xff] %v3440_v51  ;;  %v3482_v54 = vpop.eup %2505  ;;  %1763 = vmatpush.msra.mxu0 %v1696_v62  ;;  %v1693_v62 = vld [vmem:[%s3003_s22 + $0x28] sm:$0xff]  ;;  %vm1179_vm7 = vweird.f32 %v3479_v35 }
 0x135   : > { %4933 = vst [vmem:[#allocation25_spill] sm:$0xff] %v3442_v41  ;;  %v2508_v3 = vpop.eup %2507  ;;  %1895 = vmatpush.msra.mxu2 %v1693_v62  ;;  %v1691_v62 = vld [vmem:[%s3003_s22 + $0x18] sm:$0xff]  ;;  %vm1150_vm1 = vweird.f32 %v3482_v54 }
 0x136   : > { %4934 = vst [vmem:[#allocation26_spill] sm:$0xff] %v3444_v44  ;;  %808 = vmatmul.f32.gmra.mxu0 %v3231_v26  ;;  %873 = vmatmul.f32.gmra.mxu1 %v3233_v27  ;;  %v3504_v17 = vadd.f32 1.0, %v2508_v3  ;;  %vm3585_vm3 = vmor %vm1149_vm0, %vm1150_vm1 }
 0x137   : > { %938 = vmatmul.f32.gmra.mxu2 %v3231_v26  ;;  %1003 = vmatmul.f32.gmra.mxu3 %v3233_v27  ;;  %v2372_v26 = vmul.f32 -1.442695, %v3451_v22  ;;  %v2373_v27 = vmul.f32 -1.442695, %v3299_v4  ;;  %v3506_v23 = vpop.eup %2509 }
 0x138   : > { %1896 = vmatpush.msra.mxu2 %v1691_v62  ;;  %vm1165_vm5 = vweird.f32 %v3506_v23  ;;  %vm1194_vm11 = vweird.f32 %v3504_v17 }
 0x139   : > { %2511 = vpow2.f32 %v2372_v26  ;;  %v1694_v26 = vld [vmem:[%s3003_s22 + $0x30] sm:$0xff]  ;;  %vm3637_vm10 = vmor %vm1164_vm4, %vm1165_vm5 }
 0x13a   : > { %v3461_v8 = vpop.f32.mrf.mxu2  ;;  %v3463_v9 = vpop.f32.mrf.mxu3  ;;  %2513 = vpow2.f32 %v2373_v27  ;;  %v1145_v27 = vmul.f32 %v3482_v54, %v3446_v2  ;;  %1764 = vmatpush.msra.mxu0 %v1694_v26  ;;  %v1160_v26 = vmul.f32 %v3506_v23, %v3465_v56 }
 0x13b   : > { %4935 = vst [vmem:[#allocation27_spill] sm:$0xff] %v3461_v8  ;;  %v3468_v53 = vpop.f32.mrf.mxu0  ;;  %v3470_v11 = vpop.f32.mrf.mxu1  ;;  %2515 = vrcp.f32 %v3479_v35 }
 0x13c   : > { %4936 = vst [vmem:[#allocation28_spill] sm:$0xff] %v3463_v9  ;;  %2517 = vpow2.f32 %v2374_v61  ;;  %v1146_v3 = vsub.f32 1.0, %v1145_v27 }
 0x13d   : > { %4937 = vst [vmem:[#allocation29_spill] sm:$0xff] %v3468_v53  ;;  %2519 = vrcp.f32 %v3504_v17 }
 0x13e   : > { %4938 = vst [vmem:[#allocation30_spill] sm:$0xff] %v3470_v11  ;;  %811 = vmatmul.f32.gmra.mxu0 %v3241_v32  ;;  %876 = vmatmul.f32.gmra.mxu1 %v3243_v33  ;;  %v1726_v11 = vld [vmem:[%s3003_s22 + $0x130] sm:$0xff]  ;;  %2521 = vpow2.f32 %v2375_v63 }
 0x13f   : > { %941 = vmatmul.f32.gmra.mxu2 %v3241_v32  ;;  %1006 = vmatmul.f32.gmra.mxu3 %v3243_v33  ;;  %v1730_v32 = vld [vmem:[%s3003_s22 + $0x150] sm:$0xff]  ;;  %v1729_v33 = vld [vmem:[%s3003_s22 + $0x148] sm:$0xff] }
 0x140   : > { %1827 = vmatpush.msra.mxu1 %v1730_v32  ;;  %1958 = vmatpush.msra.mxu3 %v1729_v33  ;;  %v1727_v33 = vld [vmem:[%s3003_s22 + $0x138] sm:$0xff] }
 0x142   : > { %v3489_v5 = vpop.f32.mrf.mxu2  ;;  %v3491_v6 = vpop.f32.mrf.mxu3  ;;  %1959 = vmatpush.msra.mxu3 %v1727_v33 }
 0x143   : > { %4939 = vst [vmem:[#allocation31_spill] sm:$0xff] %v3489_v5  ;;  %v3497_v57 = vpop.f32.mrf.mxu0  ;;  %v3499_v34 = vpop.f32.mrf.mxu1  ;;  %v1728_v5 = vld [vmem:[%s3003_s22 + $0x140] sm:$0xff] }
 0x144   : > { %4940 = vst [vmem:[#allocation32_spill] sm:$0xff] %v3491_v6  ;;  %v2512_v6 = vpop.eup %2511  ;;  %1828 = vmatpush.msra.mxu1 %v1728_v5 }
 0x145   : > { %4941 = vst [vmem:[#allocation33_spill] sm:$0xff] %v3497_v57  ;;  %v2514_v57 = vpop.eup %2513  ;;  %v3519_v32 = vadd.f32 1.0, %v2512_v6  ;;  %v1725_v6 = vld [vmem:[%s3003_s22 + $0x128] sm:$0xff] }
 0x146   : > { %4942 = vst [vmem:[#allocation34_spill] sm:$0xff] %v3499_v34  ;;  %v1692_v34 = vld [vmem:[%s3003_s22 + $0x20] sm:$0xff]  ;;  %v3515_v61 = vpop.eup %2515  ;;  %814 = vmatmul.f32.gmra.mxu0 %v3249_v36  ;;  %879 = vmatmul.f32.gmra.mxu1 %v3251_v37 }
 0x147   : > { %1765 = vmatpush.msra.mxu0 %v1692_v34  ;;  %v3525_v34 = vadd.f32 1.0, %v2514_v57  ;;  %1829 = vmatpush.msra.mxu1 %v1726_v11  ;;  %v2518_v53 = vpop.eup %2517  ;;  %v1724_v57 = vld [vmem:[%s3003_s22 + $0x120] sm:$0xff]  ;;  %v1147_v11 = vmul.f32 %v3482_v54, %v1146_v3  ;;  %v1175_v33 = vmul.f32 %v3515_v61, %v3479_v35  ;;  %2523 = vrcp.f32 %v3519_v32 }
 0x148   : > { %944 = vmatmul.f32.gmra.mxu2 %v3249_v36  ;;  %1009 = vmatmul.f32.gmra.mxu3 %v3251_v37  ;;  %v1161_v36 = vsub.f32 1.0, %v1160_v26  ;;  %v1723_v37 = vld [vmem:[%s3003_s22 + $0x118] sm:$0xff]  ;;  %v1153_v3 = vand.u32 2147483647, %v3446_v2  ;;  %v3553_v63 = vadd.f32 1.0, %v2518_v53  ;;  %vm1180_vm8 = vweird.f32 %v3515_v61 }
 0x149   : > { %1960 = vmatpush.msra.mxu3 %v1725_v6  ;;  %1830 = vmatpush.msra.mxu1 %v1724_v57  ;;  %2525 = vrcp.f32 %v3525_v34  ;;  %v1148_v26 = vadd.f32 %v3482_v54, %v1147_v11  ;;  %v1176_v62 = vsub.f32 1.0, %v1175_v33  ;;  %v1689_v57 = vld [vmem:[%s3003_s22 + $0x8] sm:$0xff]  ;;  %v1168_v11 = vand.u32 2147483647, %v3465_v56  ;;  %vm3677_vm12 = vmor %vm1179_vm7, %vm1180_vm8 }
 0x14a   : > { %v3527_v5 = vpop.f32.mrf.mxu2  ;;  %v3529_v27 = vpop.f32.mrf.mxu3  ;;  %vm3568_vm2 = vcmp.eq.f32.partialorder %v1153_v3, 8.507059e+37  ;;  %v1170_v33 = vand.u32 2147483648, %v3465_v56  ;;  %2527 = vrcp.f32 %v3553_v63  ;;  %1897 = vmatpush.msra.mxu2 %v1689_v57  ;;  %v2378_v56 = vmul.f32 -1.442695, %v3611_v43 }
 0x14b   : > { %4943 = vst [vmem:[#allocation35_spill] sm:$0xff] %v3527_v5  ;;  %v3535_v9 = vpop.f32.mrf.mxu0  ;;  %v3537_v8 = vpop.f32.mrf.mxu1  ;;  %1961 = vmatpush.msra.mxu3 %v1723_v37  ;;  %v1162_v5 = vmul.f32 %v3506_v23, %v1161_v36  ;;  %v1177_v59 = vmul.f32 %v3515_v61, %v1176_v62  ;;  %vm3613_vm6 = vcmp.eq.f32.partialorder %v1168_v11, 8.507059e+37  ;;  %v1721_v62 = vld [vmem:[%s3003_s22 + $0x108] sm:$0xff]  ;;  %v2377_v11 = vmul.f32 -1.442695, %v3331_v40 }
 0x14c   : > { %4944 = vst [vmem:[#allocation36_spill] sm:$0xff] %v3529_v27  ;;  %v3545_v27 = vadd.f32 %v3317_v19, %v3315_v18  ;;  %v1690_v18 = vld [vmem:[%s3003_s22 + $0x10] sm:$0xff]  ;;  %v1155_v19 = vand.u32 2147483648, %v3446_v2  ;;  %vm1209_vm15 = vweird.f32 %v3519_v32  ;;  %vm1239_vm7 = vweird.f32 %v3553_v63 }
 0x14d   : > { %4945 = vst [vmem:[#allocation37_spill] sm:$0xff] %v3535_v9  ;;  %1766 = vmatpush.msra.mxu0 %v1690_v18  ;;  %v1688_v9 = vld [vmem:[%s3003_s22] sm:$0xff]  ;;  %1962 = vmatpush.msra.mxu3 %v1721_v62  ;;  %v1198_v18 = vand.u32 2147483647, %v3504_v17  ;;  %v2379_v62 = vmul.f32 -1.442695, %v3345_v46 }
 0x14e   : > { %4946 = vst [vmem:[#allocation38_spill] sm:$0xff] %v3537_v8  ;;  %v3549_v8 = vpop.eup %2519  ;;  %v2376_v6 = vmul.f32 -1.442695, %v3545_v27  ;;  %817 = vmatmul.f32.gmra.mxu0 %v3257_v38  ;;  %882 = vmatmul.f32.gmra.mxu1 %v3259_v39  ;;  %v1156_v51 = vor.u32 1.1754944e-38, %v1155_v19  ;;  %v1152_v19 = vsel %vm3585_vm3, %v3482_v54, %v1148_v26  ;;  %v1171_v54 = vor.u32 1.1754944e-38, %v1170_v33 }
 0x14f   : > { %v1190_v53 = vmul.f32 %v3549_v8, %v3504_v17  ;;  %v2522_v37 = vpop.eup %2521  ;;  %1767 = vmatpush.msra.mxu0 %v1688_v9  ;;  %vm1195_vm13 = vweird.f32 %v3549_v8  ;;  %vm3689_vm14 = vcmp.eq.f32.partialorder %v1198_v18, 8.507059e+37  ;;  %vm1224_vm3 = vweird.f32 %v3525_v34 }
 0x150   : > { %v3579_v41 = vpop.eup %2523  ;;  %947 = vmatmul.f32.gmra.mxu2 %v3257_v38  ;;  %1012 = vmatmul.f32.gmra.mxu3 %v3259_v39  ;;  %2529 = vpow2.f32 %v2376_v6  ;;  %v1722_v38 = vld [vmem:[%s3003_s22 + $0x110] sm:$0xff]  ;;  %v1163_v39 = vadd.f32 %v3506_v23, %v1162_v5  ;;  %v3607_v14 = vadd.f32 1.0, %v2522_v37  ;;  %v1720_v5 = vld [vmem:[%s3003_s22 + $0x100] sm:$0xff]  ;;  %v1157_v6 = vsel %vm3568_vm2, %v1156_v51, %v1152_v19  ;;  %vm3708_vm0 = vmor %vm1194_vm11, %vm1195_vm13 }
 0x151   : > { %v3598_v2 = vpop.eup %2525  ;;  %v1191_v15 = vsub.f32 1.0, %v1190_v53  ;;  %1831 = vmatpush.msra.mxu1 %v1722_v38  ;;  %v1205_v26 = vmul.f32 %v3579_v41, %v3519_v32  ;;  %v3652_v38 = vmul.f32 %v1157_v6, %v3405_v47  ;;  %vm1210_vm2 = vweird.f32 %v3579_v41 }
 0x152   : > { %v3575_v44 = vpop.f32.mrf.mxu2  ;;  %v3577_v36 = vpop.f32.mrf.mxu3  ;;  %v1220_v53 = vmul.f32 %v3598_v2, %v3525_v34  ;;  %v1167_v33 = vsel %vm3637_vm10, %v3506_v23, %v1163_v39  ;;  %2531 = vrcp.f32 %v3607_v14  ;;  %v1213_v39 = vand.u32 2147483647, %v3519_v32 }
 0x153   : > { %4949 = vst [vmem:[#allocation39_spill] sm:$0xff] %v3575_v44  ;;  %v1183_v44 = vand.u32 2147483647, %v3479_v35  ;;  %v3594_v9 = vpop.f32.mrf.mxu0  ;;  %v3596_v57 = vpop.f32.mrf.mxu1  ;;  %1832 = vmatpush.msra.mxu1 %v1720_v5  ;;  %v3657_v5 = vadd.f32 %v3342_v1, %v3340_v0  ;;  %v1172_v0 = vsel %vm3613_vm6, %v1171_v54, %v1167_v33  ;;  %2533 = vpow2.f32 %v2377_v11  ;;  %vm3754_vm6 = vmor %vm1209_vm15, %vm1210_vm2 }
 0x154   : > { %4950 = vst [vmem:[#allocation40_spill] sm:$0xff] %v3577_v36  ;;  %v1185_v36 = vand.u32 2147483648, %v3479_v35  ;;  %v3631_v37 = vpop.eup %2527  ;;  %v1221_v51 = vsub.f32 1.0, %v1220_v53  ;;  %v1215_v53 = vand.u32 2147483648, %v3519_v32  ;;  %2535 = vpow2.f32 %v2378_v56 }
 0x155   : > { %vm3625_vm9 = vcmp.eq.f32.partialorder %v1183_v44, 8.507059e+37  ;;  %v1178_v44 = vadd.f32 %v3515_v61, %v1177_v59  ;;  %v1206_v59 = vsub.f32 1.0, %v1205_v26  ;;  %v1235_v47 = vmul.f32 %v3631_v37, %v3553_v63 }
 0x156   : > { %v1186_v31 = vor.u32 1.1754944e-38, %v1185_v36  ;;  %v1192_v36 = vmul.f32 %v3549_v8, %v1191_v15  ;;  %v2530_v19 = vpop.eup %2529  ;;  %v1200_v15 = vand.u32 2147483648, %v3504_v17  ;;  %2537 = vpow2.f32 %v2379_v62 }
 0x157   : > { %v1182_v46 = vsel %vm3677_vm12, %v3515_v61, %v1178_v44  ;;  %v3687_v54 = vadd.f32 1.0, %v2530_v19  ;;  %v1207_v33 = vmul.f32 %v3579_v41, %v1206_v59  ;;  %v2380_v43 = vmul.f32 -1.442695, %v3657_v5 }
 0x158   : > { %v1193_v3 = vadd.f32 %v3549_v8, %v1192_v36  ;;  %v3695_v42 = vpop.eup %2531  ;;  %v1201_v11 = vor.u32 1.1754944e-38, %v1200_v15  ;;  %v1222_v61 = vmul.f32 %v3598_v2, %v1221_v51  ;;  %v1236_v44 = vsub.f32 1.0, %v1235_v47 }
 0x159   : > { %v3700_v36 = vmul.f32 %v1172_v0, %v3275_v50  ;;  %v1187_v18 = vsel %vm3625_vm9, %v1186_v31, %v1182_v46  ;;  %vm3712_vm1 = vcmp.eq.f32.partialorder %v1213_v39, 8.507059e+37  ;;  %v1216_v59 = vor.u32 1.1754944e-38, %v1215_v53  ;;  %v2534_v17 = vpop.eup %2533 }
 0x15a   : > { %v3659_v40 = vpop.f32.mrf.mxu2  ;;  %v3661_v23 = vpop.f32.mrf.mxu3  ;;  %v1228_v62 = vand.u32 2147483647, %v3525_v34  ;;  %v1197_v50 = vsel %vm3708_vm0, %v3549_v8, %v1193_v3  ;;  %v1230_v46 = vand.u32 2147483648, %v3525_v34  ;;  %2539 = vrcp.f32 %v3687_v54 }
 0x15b   : > { %v3667_v6 = vpop.f32.mrf.mxu0  ;;  %v3669_v26 = vpop.f32.mrf.mxu1  ;;  %v1208_v30 = vadd.f32 %v3579_v41, %v1207_v33  ;;  %v1250_v31 = vmul.f32 %v3695_v42, %v3607_v14  ;;  %2541 = vpow2.f32 %v2380_v43  ;;  %v2381_v15 = vmul.f32 -1.442695, %v3359_v52 }
 0x15c   : > { %v2536_v8 = vpop.eup %2535  ;;  %v1223_v47 = vadd.f32 %v3598_v2, %v1222_v61  ;;  %vm1225_vm4 = vweird.f32 %v3598_v2  ;;  %v1237_v0 = vmul.f32 %v3631_v37, %v1236_v44  ;;  %v3736_v53 = vmul.f32 %v1187_v18, %v3431_v16 }
 0x15d   : > { %v2538_v1 = vpop.eup %2537  ;;  %vm3738_vm5 = vcmp.eq.f32.partialorder %v1228_v62, 8.507059e+37  ;;  %v1243_v3 = vand.u32 2147483647, %v3553_v63  ;;  %v1245_v33 = vand.u32 2147483648, %v3553_v63  ;;  %v1202_v52 = vsel %vm3689_vm14, %v1201_v11, %v1197_v50  ;;  %vm3768_vm8 = vmor %vm1224_vm3, %vm1225_vm4 }
 0x15e   : > { %v1231_v44 = vor.u32 1.1754944e-38, %v1230_v46  ;;  %v3759_v18 = vadd.f32 1.0, %v2534_v17  ;;  %v1212_v62 = vsel %vm3754_vm6, %v3579_v41, %v1208_v30  ;;  %v1251_v32 = vsub.f32 1.0, %v1250_v31 }
 0x15f   : > { %v3772_v11 = vadd.f32 1.0, %v2536_v8  ;;  %2543 = vpow2.f32 %v2381_v15  ;;  %v1227_v46 = vsel %vm3768_vm8, %v3598_v2, %v1223_v47  ;;  %v1238_v41 = vadd.f32 %v3631_v37, %v1237_v0 }
 0x160   : > { %v3774_v50 = vpop.eup %2539  ;;  %vm1240_vm9 = vweird.f32 %v3631_v37  ;;  %v3781_v17 = vadd.f32 1.0, %v2538_v1  ;;  %v3784_v30 = vmul.f32 %v1202_v52, %v3285_v55  ;;  %vm3786_vm10 = vcmp.eq.f32.partialorder %v1243_v3, 8.507059e+37 }
 0x161   : > { %v2542_v34 = vpop.eup %2541  ;;  %v1246_v15 = vor.u32 1.1754944e-38, %v1245_v33  ;;  %v3792_v8 = vadd.f32 %v3357_v10, %v3355_v7  ;;  %v1217_v2 = vsel %vm3712_vm1, %v1216_v59, %v1212_v62  ;;  %v1258_v47 = vand.u32 2147483647, %v3607_v14  ;;  %vm3803_vm11 = vmor %vm1239_vm7, %vm1240_vm9 }
 0x162   : > { %v3727_v39 = vpop.f32.mrf.mxu2  ;;  %v3729_v51 = vpop.f32.mrf.mxu3  ;;  %v1260_v0 = vand.u32 2147483648, %v3607_v14  ;;  %2545 = vrcp.f32 %v3759_v18  ;;  %v1232_v55 = vsel %vm3738_vm5, %v1231_v44, %v1227_v46  ;;  %v1252_v7 = vmul.f32 %v3695_v42, %v1251_v32 }
 0x163   : > { %v3744_v56 = vpop.f32.mrf.mxu0  ;;  %v3746_v61 = vpop.f32.mrf.mxu1  ;;  %v1265_v10 = vmul.f32 %v3774_v50, %v3687_v54  ;;  %2547 = vrcp.f32 %v3772_v11  ;;  %v1242_v19 = vsel %vm3803_vm11, %v3631_v37, %v1238_v41  ;;  %vm1254_vm12 = vweird.f32 %v3607_v14 }
 0x164   : > { %2549 = vrcp.f32 %v3781_v17  ;;  %v3816_v63 = vadd.f32 1.0, %v2542_v34  ;;  %v3823_v3 = vmul.f32 %v1217_v2, %v3451_v22  ;;  %v2382_v33 = vmul.f32 -1.442695, %v3792_v8 }
 0x165   : > { %v2544_v43 = vpop.eup %2543  ;;  %v839_v16 = vadd.f32 %v3596_v57, %v3594_v9  ;;  %v969_v37 = vadd.f32 %v3661_v23, %v3659_v40  ;;  %v3835_v35 = vmul.f32 %v1232_v55, %v3299_v4  ;;  %vm3837_vm13 = vcmp.eq.f32.partialorder %v1258_v47, 8.507059e+37 }
 0x166   : > { %v1261_v22 = vor.u32 1.1754944e-38, %v1260_v0  ;;  %v1275_v46 = vand.u32 2147483648, %v3687_v54  ;;  %v1247_v9 = vsel %vm3786_vm10, %v1246_v15, %v1242_v19  ;;  %v1253_v57 = vadd.f32 %v3695_v42, %v1252_v7 }
 0x167   : > { %vm1255_vm14 = vweird.f32 %v3695_v42  ;;  %v1266_v40 = vsub.f32 1.0, %v1265_v10  ;;  %2551 = vrcp.f32 %v3816_v63  ;;  %v3849_v4 = vadd.f32 1.0, %v2544_v43 }
 0x168   : > { %v3846_v23 = vpop.eup %2545  ;;  %v3853_v41 = vadd.f32 %v3367_v28, %v3365_v12  ;;  %v1656_v34 = vmul.f32 %v3652_v38, %v839_v16  ;;  %vm1269_vm15 = vweird.f32 %v3687_v54  ;;  %v1273_v31 = vand.u32 2147483647, %v3687_v54  ;;  %vm3876_vm0 = vmor %vm1254_vm12, %vm1255_vm14 }
 0x169   : > { %v3856_v2 = vpop.eup %2547  ;;  %2553 = vpow2.f32 %v2382_v33  ;;  %v1657_v15 = vmul.f32 %v3700_v36, %v969_v37  ;;  %v3863_v0 = vor.u32 1.1754944e-38, %v1275_v46  ;;  %v1290_v55 = vand.u32 2147483648, %v3759_v18 }
 0x16a   : > { %v3818_v59 = vpop.f32.mrf.mxu2  ;;  %v3820_v1 = vpop.f32.mrf.mxu3  ;;  %v2383_v12 = vmul.f32 -1.442695, %v3369_v29  ;;  %1768 = vmatmul.f32.vlgmr.msra.gmra.mxu0 %v1656_v34  ;;  %1898 = vmatmul.f32.vlgmr.msra.gmra.mxu2 %v1656_v34  ;;  %v842_v28 = vadd.f32 %v3669_v26, %v3667_v6  ;;  %v3870_v38 = vmul.f32 %v1247_v9, %v3476_v58  ;;  %v1267_v52 = vmul.f32 %v3774_v50, %v1266_v40 }
 0x16b   : > { %v3830_v44 = vpop.f32.mrf.mxu0  ;;  %v3832_v62 = vpop.f32.mrf.mxu1  ;;  %v1280_v7 = vmul.f32 %v3846_v23, %v3759_v18  ;;  %1833 = vmatmul.f32.vlgmr.msra.gmra.mxu1 %v1657_v15  ;;  %v972_v6 = vadd.f32 %v3729_v51, %v3727_v39  ;;  %v1257_v58 = vsel %vm3876_vm0, %v3695_v42, %v1253_v57  ;;  %v1295_v14 = vmul.f32 %v3856_v2, %v3772_v11 }
 0x16c   : > { %v3861_v47 = vpop.eup %2549  ;;  %2555 = vrcp.f32 %v3849_v4  ;;  %v2384_v26 = vmul.f32 -1.442695, %v3853_v41  ;;  %1963 = vmatmul.f32.vlgmr.msra.gmra.mxu3 %v1657_v15  ;;  %vm1270_vm1 = vweird.f32 %v3774_v50  ;;  %vm3897_vm2 = vcmp.eq.f32.partialorder %v1273_v31, 8.507059e+37 }
 0x16d   : > { %v1288_v42 = vand.u32 2147483647, %v3759_v18  ;;  %v1310_v51 = vmul.f32 %v3861_v47, %v3781_v17  ;;  %v3906_v43 = vadd.f32 %v3381_v21, %v3379_v20  ;;  %v3912_v37 = vpop.eup %2551  ;;  %v3914_v46 = vor.u32 1.1754944e-38, %v1290_v55  ;;  %vm3938_vm5 = vmor %vm1269_vm15, %vm1270_vm1 }
 0x16e   : > { %v1305_v9 = vand.u32 2147483648, %v3772_v11  ;;  %2557 = vpow2.f32 %v2383_v12  ;;  %v1658_v57 = vmul.f32 %v3736_v53, %v842_v28  ;;  %v1262_v34 = vsel %vm3837_vm13, %v1261_v22, %v1257_v58 }
 0x16f   : > { %v2554_v40 = vpop.eup %2553  ;;  %v1268_v20 = vadd.f32 %v3774_v50, %v1267_v52  ;;  %v1281_v21 = vsub.f32 1.0, %v1280_v7  ;;  %v1659_v31 = vmul.f32 %v3784_v30, %v972_v6  ;;  %v1296_v15 = vsub.f32 1.0, %v1295_v14 }
 0x170   : > { %vm1299_vm3 = vweird.f32 %v3772_v11  ;;  %v1320_v55 = vand.u32 2147483648, %v3781_v17  ;;  %2559 = vpow2.f32 %v2384_v26  ;;  %vm1284_vm4 = vweird.f32 %v3759_v18  ;;  %v5008_v18 = vld [vmem:[#allocation17_spill] sm:$0xff] }
 0x171   : > { %v1303_v12 = vand.u32 2147483647, %v3772_v11  ;;  %v1311_v53 = vsub.f32 1.0, %v1310_v51  ;;  %v1325_v32 = vmul.f32 %v3912_v37, %v3816_v63  ;;  %v2385_v22 = vmul.f32 -1.442695, %v3906_v43 }
 0x172   : > { %v3892_v10 = vpop.f32.mrf.mxu2  ;;  %v3894_v19 = vpop.f32.mrf.mxu3  ;;  %v3932_v30 = vmul.f32 %v1262_v34, %v3313_v13  ;;  %v1318_v52 = vand.u32 2147483647, %v3781_v17  ;;  %v3943_v7 = vadd.f32 1.0, %v2554_v40  ;;  %1771 = vmatmul.f32.gmra.mxu0 %v1658_v57  ;;  %1901 = vmatmul.f32.gmra.mxu2 %v1658_v57  ;;  %v845_v6 = vadd.f32 %v3746_v61, %v3744_v56 }
 0x173   : > { %v3908_v33 = vpop.f32.mrf.mxu0  ;;  %v3910_v16 = vpop.f32.mrf.mxu1  ;;  %v1272_v13 = vsel %vm3938_vm5, %v3774_v50, %v1268_v20  ;;  %v1282_v58 = vmul.f32 %v3846_v23, %v1281_v21  ;;  %v3951_v54 = vor.u32 1.1754944e-38, %v1305_v9  ;;  %vm1314_vm6 = vweird.f32 %v3781_v17  ;;  %1836 = vmatmul.f32.gmra.mxu1 %v1659_v31 }
 0x174   : > { %v3929_v28 = vpop.eup %2555  ;;  %v975_v14 = vadd.f32 %v3820_v1, %v3818_v59  ;;  %vm1285_vm7 = vweird.f32 %v3846_v23  ;;  %v1297_v51 = vmul.f32 %v3856_v2, %v1296_v15  ;;  %v3958_v56 = vor.u32 1.1754944e-38, %v1320_v55  ;;  %1966 = vmatmul.f32.gmra.mxu3 %v1659_v31  ;;  %v5006_v55 = vld [vmem:[#allocation16_spill] sm:$0xff] }
 0x175   : > { %v2558_v26 = vpop.eup %2557  ;;  %v3962_v61 = vadd.f32 %v3385_v25, %v3383_v24  ;;  %v1312_v57 = vmul.f32 %v3861_v47, %v1311_v53  ;;  %v1326_v40 = vsub.f32 1.0, %v1325_v32  ;;  %v1340_v59 = vmul.f32 %v3929_v28, %v3849_v4  ;;  %vm4016_vm13 = vmor %vm1284_vm4, %vm1285_vm7 }
 0x176   : > { %2561 = vpow2.f32 %v2385_v22  ;;  %v2560_v20 = vpop.eup %2559  ;;  %v1277_v24 = vsel %vm3897_vm2, %v3863_v0, %v1272_v13  ;;  %vm3978_vm8 = vcmp.eq.f32.partialorder %v1288_v42, 8.507059e+37  ;;  %vm1300_vm9 = vweird.f32 %v3856_v2 }
 0x177   : > { %2563 = vrcp.f32 %v3943_v7  ;;  %v1660_v21 = vmul.f32 %v3823_v3, %v845_v6  ;;  %v1283_v31 = vadd.f32 %v3846_v23, %v1282_v58  ;;  %vm3986_vm10 = vcmp.eq.f32.partialorder %v1303_v12, 8.507059e+37  ;;  %vm4031_vm15 = vmor %vm1299_vm3, %vm1300_vm9 }
 0x178   : > { %vm3990_vm11 = vcmp.eq.f32.partialorder %v1318_v52, 8.507059e+37  ;;  %v1333_v0 = vand.u32 2147483647, %v3816_v63  ;;  %v3995_v39 = vadd.f32 1.0, %v2558_v26  ;;  %v1661_v42 = vmul.f32 %v3835_v35, %v975_v14 }
 0x179   : > { %v1298_v53 = vadd.f32 %v3856_v2, %v1297_v51  ;;  %vm1315_vm12 = vweird.f32 %v3861_v47  ;;  %v2386_v3 = vmul.f32 -1.442695, %v3962_v61  ;;  %v4003_v12 = vadd.f32 %v3397_v48, %v3395_v45 }
 0x17a   : > { %v3964_v50 = vpop.f32.mrf.mxu2  ;;  %v3966_v9 = vpop.f32.mrf.mxu3  ;;  %v1313_v32 = vadd.f32 %v3861_v47, %v1312_v57  ;;  %v1327_v22 = vmul.f32 %v3912_v37, %v1326_v40  ;;  %v1341_v36 = vsub.f32 1.0, %v1340_v59  ;;  %v4007_v52 = vadd.f32 1.0, %v2560_v20  ;;  %1774 = vmatmul.f32.gmra.mxu0 %v1660_v21  ;;  %1904 = vmatmul.f32.gmra.mxu2 %v1660_v21  ;;  %vm4053_vm2 = vmor %vm1314_vm6, %vm1315_vm12 }
 0x17b   : > { %v3971_v1 = vpop.f32.mrf.mxu0  ;;  %v3973_v34 = vpop.f32.mrf.mxu1  ;;  %v4010_v6 = vmul.f32 %v1277_v24, %v3545_v27  ;;  %vm1329_vm14 = vweird.f32 %v3816_v63  ;;  %v1335_v45 = vand.u32 2147483648, %v3816_v63  ;;  %v848_v48 = vadd.f32 %v3832_v62, %v3830_v44  ;;  %1839 = vmatmul.f32.gmra.mxu1 %v1661_v42  ;;  %v5004_v63 = vld [vmem:[#allocation19_spill] sm:$0xff] }
 0x17c   : > { %v2562_v13 = vpop.eup %2561  ;;  %v1287_v27 = vsel %vm4016_vm13, %v3846_v23, %v1283_v31  ;;  %vm4035_vm0 = vcmp.eq.f32.partialorder %v1333_v0, 8.507059e+37  ;;  %vm1344_vm1 = vweird.f32 %v3849_v4  ;;  %v1348_v44 = vand.u32 2147483647, %v3849_v4  ;;  %1969 = vmatmul.f32.gmra.mxu3 %v1661_v42 }
 0x17d   : > { %2565 = vrcp.f32 %v3995_v39  ;;  %v978_v62 = vadd.f32 %v3894_v19, %v3892_v10  ;;  %v4044_v23 = vpop.eup %2563  ;;  %v1302_v11 = vsel %vm4031_vm15, %v3856_v2, %v1298_v53  ;;  %vm1330_vm3 = vweird.f32 %v3912_v37 }
 0x17e   : > { %2567 = vpow2.f32 %v2386_v3  ;;  %v2387_v26 = vmul.f32 -1.442695, %v4003_v12  ;;  %v1317_v2 = vsel %vm4053_vm2, %v3861_v47, %v1313_v32  ;;  %v1328_v17 = vadd.f32 %v3912_v37, %v1327_v22  ;;  %vm4097_vm4 = vmor %vm1329_vm14, %vm1330_vm3 }
 0x17f   : > { %v1342_v51 = vmul.f32 %v3929_v28, %v1341_v36  ;;  %2569 = vrcp.f32 %v4007_v52  ;;  %v1336_v59 = vor.u32 1.1754944e-38, %v1335_v45  ;;  %v1350_v20 = vand.u32 2147483648, %v3849_v4 }
 0x180   : > { %v4076_v24 = vadd.f32 %v3401_v60, %v3399_v49  ;;  %v1662_v21 = vmul.f32 %v3870_v38, %v848_v48  ;;  %v1292_v47 = vsel %vm3978_vm8, %v3914_v46, %v1287_v27  ;;  %v1355_v31 = vmul.f32 %v4044_v23, %v3943_v7  ;;  %v5015_v38 = vld [vmem:[#allocation23_spill] sm:$0xff] }
 0x181   : > { %v4084_v0 = vadd.f32 1.0, %v2562_v13  ;;  %v1663_v42 = vmul.f32 %v3932_v30, %v978_v62  ;;  %v1307_v53 = vsel %vm3986_vm10, %v3951_v54, %v1302_v11  ;;  %v1322_v49 = vsel %vm3990_vm11, %v3958_v56, %v1317_v2  ;;  %v5005_v56 = vld [vmem:[#allocation20_spill] sm:$0xff]  ;;  %v5007_v13 = vld [vmem:[#allocation41_spill] sm:$0xff] }
 0x182   : > { %v4059_v10 = vpop.f32.mrf.mxu2  ;;  %v4061_v19 = vpop.f32.mrf.mxu3  ;;  %vm4101_vm5 = vcmp.eq.f32.partialorder %v1348_v44, 8.507059e+37  ;;  %2571 = vpow2.f32 %v2387_v26  ;;  %v1332_v30 = vsel %vm4097_vm4, %v3912_v37, %v1328_v17  ;;  %v1343_v54 = vadd.f32 %v3929_v28, %v1342_v51  ;;  %1777 = vmatmul.f32.gmra.mxu0 %v1662_v21  ;;  %1907 = vmatmul.f32.gmra.mxu2 %v1662_v21 }
 0x183   : > { %v4069_v57 = vpop.f32.mrf.mxu0  ;;  %v4071_v40 = vpop.f32.mrf.mxu1  ;;  %vm1345_vm6 = vweird.f32 %v3929_v28  ;;  %v4114_v25 = vadd.f32 %v5005_v56, %v5004_v63  ;;  %v1633_v3 = vmul.f32 %v1292_v47, %v5006_v55  ;;  %v1351_v32 = vor.u32 1.1754944e-38, %v1350_v20  ;;  %1842 = vmatmul.f32.gmra.mxu1 %v1663_v42  ;;  %v5016_v56 = vld [vmem:[#allocation24_spill] sm:$0xff] }
 0x184   : > { %v4105_v46 = vpop.eup %2565  ;;  %v2388_v22 = vmul.f32 -1.442695, %v4076_v24  ;;  %v851_v36 = vadd.f32 %v3910_v16, %v3908_v33  ;;  %v1356_v35 = vsub.f32 1.0, %v1355_v31  ;;  %v1365_v45 = vand.u32 2147483648, %v3943_v7  ;;  %vm4136_vm7 = vmor %vm1344_vm1, %vm1345_vm6  ;;  %1972 = vmatmul.f32.gmra.mxu3 %v1663_v42 }
 0x185   : > { %v2568_v15 = vpop.eup %2567  ;;  %2573 = vrcp.f32 %v4084_v0  ;;  %v981_v48 = vadd.f32 %v3966_v9, %v3964_v50  ;;  %v1634_v27 = vmul.f32 %v1307_v53, %v5007_v13  ;;  %v4128_v44 = vmul.f32 %v1322_v49, %v5008_v18  ;;  %v5011_v49 = vld [vmem:[#allocation21_spill] sm:$0xff] }
 0x186   : > { %v4120_v37 = vpop.eup %2569  ;;  %v1337_v62 = vsel %vm4035_vm0, %v1336_v59, %v1332_v30  ;;  %vm1359_vm8 = vweird.f32 %v3943_v7  ;;  %v1347_v9 = vsel %vm4136_vm7, %v3929_v28, %v1343_v54  ;;  %v1363_v58 = vand.u32 2147483647, %v3943_v7 }
 0x187   : > { %v1370_v4 = vmul.f32 %v4105_v46, %v3995_v39  ;;  %v2389_v11 = vmul.f32 -1.442695, %v4114_v25  ;;  %v1385_v26 = vmul.f32 %v4120_v37, %v4007_v52  ;;  %v4154_v2 = vadd.f32 1.0, %v2568_v15 }
 0x188   : > { %v2572_v14 = vpop.eup %2571  ;;  %2575 = vpow2.f32 %v2388_v22  ;;  %v1664_v17 = vmul.f32 %v4010_v6, %v851_v36  ;;  %v4158_v51 = vmul.f32 %v1337_v62, %v3657_v5  ;;  %v1357_v28 = vmul.f32 %v4044_v23, %v1356_v35  ;;  %v5012_v6 = vld [vmem:[#allocation22_spill] sm:$0xff] }
 0x189   : > { %v1366_v59 = vor.u32 1.1754944e-38, %v1365_v45  ;;  %v1665_v20 = vmul.f32 %v1633_v3, %v981_v48  ;;  %v1352_v31 = vsel %vm4101_vm5, %v1351_v32, %v1347_v9  ;;  %v1378_v42 = vand.u32 2147483647, %v3995_v39  ;;  %v5017_v22 = vld [vmem:[#allocation18_spill] sm:$0xff] }
 0x18a   : > { %v4141_v16 = vpop.f32.mrf.mxu2  ;;  %v4143_v50 = vpop.f32.mrf.mxu3  ;;  %v1380_v53 = vand.u32 2147483648, %v3995_v39  ;;  %v4171_v60 = vadd.f32 %v5012_v6, %v5011_v49  ;;  %vm4175_vm9 = vcmp.eq.f32.partialorder %v1363_v58, 8.507059e+37  ;;  %v1371_v54 = vsub.f32 1.0, %v1370_v4  ;;  %1780 = vmatmul.f32.gmra.mxu0 %v1664_v17  ;;  %1910 = vmatmul.f32.gmra.mxu2 %v1664_v17  ;;  %v5037_v17 = vld [vmem:[#allocation32_spill] sm:$0xff] }
 0x18b   : > { %v4161_v21 = vpop.f32.mrf.mxu0  ;;  %v4163_v47 = vpop.f32.mrf.mxu1  ;;  %v4179_v63 = vadd.f32 1.0, %v2572_v14  ;;  %2577 = vpow2.f32 %v2389_v11  ;;  %v4183_v15 = vadd.f32 %v5016_v56, %v5015_v38  ;;  %v1386_v55 = vsub.f32 1.0, %v1385_v26  ;;  %1845 = vmatmul.f32.gmra.mxu1 %v1665_v20  ;;  %v5026_v38 = vld [vmem:[#allocation27_spill] sm:$0xff]  ;;  %v5027_v56 = vld [vmem:[#allocation28_spill] sm:$0xff] }
 0x18c   : > { %v4173_v5 = vpop.eup %2573  ;;  %v1395_v3 = vand.u32 2147483648, %v4007_v52  ;;  %2579 = vrcp.f32 %v4154_v2  ;;  %v854_v32 = vadd.f32 %v3973_v34, %v3971_v1  ;;  %v4190_v36 = vmul.f32 %v1352_v31, %v5017_v22  ;;  %1975 = vmatmul.f32.gmra.mxu3 %v1665_v20  ;;  %v5023_v20 = vld [vmem:[#allocation26_spill] sm:$0xff] }
 0x18d   : > { %v1358_v35 = vadd.f32 %v4044_v23, %v1357_v28  ;;  %vm1360_vm10 = vweird.f32 %v4044_v23  ;;  %vm1374_vm11 = vweird.f32 %v3995_v39  ;;  %v984_v45 = vadd.f32 %v4061_v19, %v4059_v10  ;;  %v5022_v28 = vld [vmem:[#allocation25_spill] sm:$0xff] }
 0x18e   : > { %v2576_v48 = vpop.eup %2575  ;;  %v4197_v13 = vor.u32 1.1754944e-38, %v1380_v53  ;;  %vm1389_vm12 = vweird.f32 %v4007_v52  ;;  %v1400_v1 = vmul.f32 %v4173_v5, %v4084_v0  ;;  %v2390_v34 = vmul.f32 -1.442695, %v4171_v60  ;;  %vm4215_vm13 = vmor %vm1359_vm8, %vm1360_vm10 }
 0x18f   : > { %v1372_v33 = vmul.f32 %v4105_v46, %v1371_v54  ;;  %v1393_v9 = vand.u32 2147483647, %v4007_v52  ;;  %2581 = vrcp.f32 %v4179_v63  ;;  %v2391_v10 = vmul.f32 -1.442695, %v4183_v15 }
 0x190   : > { %vm1375_vm14 = vweird.f32 %v4105_v46  ;;  %v1387_v58 = vmul.f32 %v4120_v37, %v1386_v55  ;;  %v4221_v4 = vor.u32 1.1754944e-38, %v1395_v3  ;;  %v1666_v11 = vmul.f32 %v1634_v27, %v854_v32 }
 0x191   : > { %v2578_v14 = vpop.eup %2577  ;;  %v1362_v26 = vsel %vm4215_vm13, %v4044_v23, %v1358_v35  ;;  %vm4226_vm15 = vcmp.eq.f32.partialorder %v1378_v42, 8.507059e+37  ;;  %v4230_v7 = vadd.f32 1.0, %v2576_v48  ;;  %v4234_v31 = vadd.f32 %v5023_v20, %v5022_v28  ;;  %vm4274_vm2 = vmor %vm1374_vm11, %vm1375_vm14 }
 0x192   : > { %v4203_v18 = vpop.f32.mrf.mxu2  ;;  %v4205_v62 = vpop.f32.mrf.mxu3  ;;  %v1667_v53 = vmul.f32 %v4128_v44, %v984_v45  ;;  %v1401_v27 = vsub.f32 1.0, %v1400_v1  ;;  %v1408_v6 = vand.u32 2147483647, %v4084_v0  ;;  %v1410_v54 = vand.u32 2147483648, %v4084_v0  ;;  %1783 = vmatmul.f32.gmra.mxu0 %v1666_v11  ;;  %1913 = vmatmul.f32.gmra.mxu2 %v1666_v11 }
 0x193   : > { %v4237_v49 = vpop.eup %2579  ;;  %2583 = vpow2.f32 %v2390_v34  ;;  %v1373_v23 = vadd.f32 %v4105_v46, %v1372_v33  ;;  %vm1390_vm0 = vweird.f32 %v4120_v37  ;;  %vm4243_vm1 = vcmp.eq.f32.partialorder %v1393_v9, 8.507059e+37  ;;  %v4251_v55 = vpop.f32.mrf.mxu0 }
 0x194   : > { %2585 = vpow2.f32 %v2391_v10  ;;  %v4249_v44 = vadd.f32 %v5027_v56, %v5026_v38  ;;  %v4253_v3 = vpop.f32.mrf.mxu1  ;;  %v1367_v32 = vsel %vm4175_vm9, %v1366_v59, %v1362_v26  ;;  %v1388_v22 = vadd.f32 %v4120_v37, %v1387_v58  ;;  %1848 = vmatmul.f32.gmra.mxu1 %v1667_v53  ;;  %1978 = vmatmul.f32.gmra.mxu3 %v1667_v53  ;;  %vm4297_vm4 = vmor %vm1389_vm12, %vm1390_vm0 }
 0x195   : > { %v4258_v35 = vadd.f32 1.0, %v2578_v14  ;;  %v857_v45 = vadd.f32 %v4071_v40, %v4069_v57  ;;  %v4262_v48 = vpop.eup %2581  ;;  %v1415_v1 = vmul.f32 %v4237_v49, %v4154_v2  ;;  %2587 = vrcp.f32 %v4230_v7 }
 0x196   : > { %v2392_v34 = vmul.f32 -1.442695, %v4234_v31  ;;  %v987_v59 = vadd.f32 %v4143_v50, %v4141_v16  ;;  %v1402_v57 = vmul.f32 %v4173_v5, %v1401_v27  ;;  %vm1404_vm3 = vweird.f32 %v4084_v0 }
 0x197   : > { %v4280_v40 = vor.u32 1.1754944e-38, %v1410_v54  ;;  %v1425_v33 = vand.u32 2147483648, %v4154_v2  ;;  %v1638_v50 = vmul.f32 %v1367_v32, %v3792_v8  ;;  %v1377_v39 = vsel %vm4274_vm2, %v4105_v46, %v1373_v23  ;;  %v5035_v54 = vld [vmem:[#allocation30_spill] sm:$0xff]  ;;  %v5046_v8 = vld [vmem:[#allocation35_spill] sm:$0xff] }
 0x198   : > { %v1423_v10 = vand.u32 2147483647, %v4154_v2  ;;  %v2393_v19 = vmul.f32 -1.442695, %v4249_v44  ;;  %vm1405_vm5 = vweird.f32 %v4173_v5  ;;  %vm4302_vm6 = vcmp.eq.f32.partialorder %v1408_v6, 8.507059e+37 }
 0x199   : > { %v2584_v58 = vpop.eup %2583  ;;  %v1430_v46 = vmul.f32 %v4262_v48, %v4179_v63  ;;  %2589 = vrcp.f32 %v4258_v35  ;;  %v1668_v14 = vmul.f32 %v4158_v51, %v857_v45  ;;  %v1392_v52 = vsel %vm4297_vm4, %v4120_v37, %v1388_v22  ;;  %v5034_v51 = vld [vmem:[#allocation29_spill] sm:$0xff]  ;;  %vm4346_vm8 = vmor %vm1404_vm3, %vm1405_vm5 }
 0x19a   : > { %v4283_v9 = vpop.f32.mrf.mxu2  ;;  %v4285_v16 = vpop.f32.mrf.mxu3  ;;  %v1416_v28 = vsub.f32 1.0, %v1415_v1  ;;  %2591 = vpow2.f32 %v2392_v34  ;;  %v1669_v20 = vmul.f32 %v4190_v36, %v987_v59  ;;  %v1382_v53 = vsel %vm4226_vm15, %v4197_v13, %v1377_v39  ;;  %v5036_v36 = vld [vmem:[#allocation31_spill] sm:$0xff] }
 0x19b   : > { %v2586_v26 = vpop.eup %2585  ;;  %v1403_v27 = vadd.f32 %v4173_v5, %v1402_v57  ;;  %vm1419_vm7 = vweird.f32 %v4154_v2  ;;  %v4319_v6 = vor.u32 1.1754944e-38, %v1425_v33  ;;  %v4323_v23 = vadd.f32 %v5035_v54, %v5034_v51  ;;  %1786 = vmatmul.f32.gmra.mxu0 %v1668_v14  ;;  %1916 = vmatmul.f32.gmra.mxu2 %v1668_v14  ;;  %v4354_v57 = vpop.f32.mrf.mxu0  ;;  %v5044_v51 = vld [vmem:[#allocation33_spill] sm:$0xff]  ;;  %v5045_v54 = vld [vmem:[#allocation34_spill] sm:$0xff] }
 0x19c   : > { %v4325_v38 = vpop.eup %2587  ;;  %v1440_v37 = vand.u32 2147483648, %v4179_v63  ;;  %v4328_v56 = vadd.f32 1.0, %v2584_v58  ;;  %2593 = vpow2.f32 %v2393_v19  ;;  %v4332_v13 = vadd.f32 %v5037_v17, %v5036_v36  ;;  %1851 = vmatmul.f32.gmra.mxu1 %v1669_v20  ;;  %1981 = vmatmul.f32.gmra.mxu3 %v1669_v20  ;;  %v5047_v36 = vld [vmem:[#allocation36_spill] sm:$0xff] }
 0x19d   : > { %v1397_v32 = vsel %vm4243_vm1, %v4221_v4, %v1392_v52  ;;  %v1431_v22 = vsub.f32 1.0, %v1430_v46  ;;  %v4337_v45 = vadd.f32 1.0, %v2586_v26  ;;  %v860_v1 = vadd.f32 %v4163_v47, %v4161_v21  ;;  %v4356_v21 = vpop.f32.mrf.mxu1 }
 0x19e   : > { %v1639_v34 = vmul.f32 %v1382_v53, %v3369_v29  ;;  %v1417_v4 = vmul.f32 %v4237_v49, %v1416_v28  ;;  %v1438_v42 = vand.u32 2147483647, %v4179_v63  ;;  %v990_v30 = vadd.f32 %v4205_v62, %v4203_v18 }
 0x19f   : > { %v4358_v29 = vpop.eup %2589  ;;  %v1407_v0 = vsel %vm4346_vm8, %v4173_v5, %v1403_v27  ;;  %vm1420_vm9 = vweird.f32 %v4237_v49  ;;  %vm1434_vm10 = vweird.f32 %v4179_v63  ;;  %v1445_v47 = vmul.f32 %v4325_v38, %v4230_v7 }
 0x1a0   : > { %v2394_v33 = vmul.f32 -1.442695, %v4323_v23  ;;  %v2592_v18 = vpop.eup %2591  ;;  %v1640_v62 = vmul.f32 %v1397_v32, %v3853_v41  ;;  %v4369_v39 = vor.u32 1.1754944e-38, %v1440_v37  ;;  %2595 = vrcp.f32 %v4328_v56  ;;  %vm4421_vm15 = vmor %vm1419_vm7, %vm1420_vm9 }
 0x1a1   : > { %v2395_v19 = vmul.f32 -1.442695, %v4332_v13  ;;  %vm4373_vm11 = vcmp.eq.f32.partialorder %v1423_v10, 8.507059e+37  ;;  %v1432_v58 = vmul.f32 %v4262_v48, %v1431_v22  ;;  %v1455_v11 = vand.u32 2147483648, %v4230_v7 }
 0x1a2   : > { %2597 = vrcp.f32 %v4337_v45  ;;  %v1670_v46 = vmul.f32 %v1638_v50, %v860_v1  ;;  %v4380_v14 = vpop.f32.mrf.mxu2  ;;  %v4382_v41 = vpop.f32.mrf.mxu3  ;;  %v1412_v52 = vsel %vm4302_vm6, %v4280_v40, %v1407_v0  ;;  %v1418_v10 = vadd.f32 %v4237_v49, %v1417_v4 }
 0x1a3   : > { %v2594_v26 = vpop.eup %2593  ;;  %v1460_v28 = vmul.f32 %v4358_v29, %v4258_v35  ;;  %v1671_v20 = vmul.f32 %v1639_v34, %v990_v30  ;;  %vm4390_vm12 = vcmp.eq.f32.partialorder %v1438_v42, 8.507059e+37  ;;  %v1446_v50 = vsub.f32 1.0, %v1445_v47 }
 0x1a4   : > { %v4394_v27 = vadd.f32 1.0, %v2592_v18  ;;  %2599 = vpow2.f32 %v2394_v33  ;;  %v4398_v37 = vadd.f32 %v5045_v54, %v5044_v51  ;;  %vm1435_vm13 = vweird.f32 %v4262_v48  ;;  %1789 = vmatmul.f32.gmra.mxu0 %v1670_v46  ;;  %1919 = vmatmul.f32.gmra.mxu2 %v1670_v46  ;;  %v5054_v54 = vld [vmem:[#allocation37_spill] sm:$0xff] }
 0x1a5   : > { %vm1449_vm14 = vweird.f32 %v4230_v7  ;;  %v1453_v40 = vand.u32 2147483647, %v4230_v7  ;;  %2601 = vpow2.f32 %v2395_v19  ;;  %v4405_v17 = vadd.f32 %v5047_v36, %v5046_v8  ;;  %1854 = vmatmul.f32.gmra.mxu1 %v1671_v20  ;;  %1984 = vmatmul.f32.gmra.mxu3 %v1671_v20  ;;  %vm4440_vm0 = vmor %vm1434_vm10, %vm1435_vm13  ;;  %v4450_v18 = vpop.f32.mrf.mxu1  ;;  %v5055_v8 = vld [vmem:[#allocation38_spill] sm:$0xff] }
 0x1a6   : > { %v1433_v32 = vadd.f32 %v4262_v48, %v1432_v58  ;;  %v4408_v22 = vor.u32 1.1754944e-38, %v1455_v11  ;;  %v4410_v1 = vadd.f32 1.0, %v2594_v26  ;;  %v863_v34 = vadd.f32 %v4253_v3, %v4251_v55  ;;  %v4414_v59 = vpop.eup %2595 }
 0x1a7   : > { %v1641_v4 = vmul.f32 %v1412_v52, %v3906_v43  ;;  %v1461_v30 = vsub.f32 1.0, %v1460_v28  ;;  %v1470_v0 = vand.u32 2147483648, %v4258_v35  ;;  %v993_v47 = vadd.f32 %v4285_v16, %v4283_v9  ;;  %v4448_v16 = vpop.f32.mrf.mxu0 }
 0x1a8   : > { %v4428_v55 = vpop.eup %2597  ;;  %v1422_v43 = vsel %vm4421_vm15, %v4237_v49, %v1418_v10  ;;  %v1447_v3 = vmul.f32 %v4325_v38, %v1446_v50  ;;  %2603 = vrcp.f32 %v4394_v27  ;;  %v2396_v2 = vmul.f32 -1.442695, %v4398_v37 }
 0x1a9   : > { %vm1450_vm1 = vweird.f32 %v4325_v38  ;;  %vm1464_vm2 = vweird.f32 %v4258_v35  ;;  %v1468_v49 = vand.u32 2147483647, %v4258_v35  ;;  %v2397_v9 = vmul.f32 -1.442695, %v4405_v17 }
 0x1aa   : > { %v2600_v19 = vpop.eup %2599  ;;  %v1437_v63 = vsel %vm4440_vm0, %v4262_v48, %v1433_v32  ;;  %v1475_v58 = vmul.f32 %v4414_v59, %v4328_v56  ;;  %2605 = vrcp.f32 %v4410_v1  ;;  %v1672_v11 = vmul.f32 %v1640_v62, %v863_v34  ;;  %v4458_v46 = vpop.f32.mrf.mxu2  ;;  %v5058_v32 = vld [vmem:[#allocation39_spill] sm:$0xff]  ;;  %v5059_v34 = vld [vmem:[#allocation40_spill] sm:$0xff]  ;;  %vm4508_vm6 = vmor %vm1449_vm14, %vm1450_vm1 }
 0x1ab   : > { %v4460_v26 = vpop.f32.mrf.mxu3  ;;  %v2602_v52 = vpop.eup %2601  ;;  %v1427_v10 = vsel %vm4373_vm11, %v4319_v6, %v1422_v43  ;;  %vm4465_vm3 = vcmp.eq.f32.partialorder %v1453_v40, 8.507059e+37  ;;  %v1462_v48 = vmul.f32 %v4358_v29, %v1461_v30  ;;  %v1490_v20 = vmul.f32 %v4428_v55, %v4337_v45 }
 0x1ac   : > { %v1673_v50 = vmul.f32 %v1641_v4, %v993_v47  ;;  %v1448_v62 = vadd.f32 %v4325_v38, %v1447_v3  ;;  %v1471_v51 = vor.u32 1.1754944e-38, %v1470_v0  ;;  %2607 = vpow2.f32 %v2396_v2  ;;  %1792 = vmatmul.f32.gmra.mxu0 %v1672_v11  ;;  %1922 = vmatmul.f32.gmra.mxu2 %v1672_v11 }
 0x1ad   : > { %v4475_v36 = vadd.f32 %v5055_v8, %v5054_v54  ;;  %v1442_v6 = vsel %vm4390_vm12, %v4369_v39, %v1437_v63  ;;  %vm4480_vm4 = vcmp.eq.f32.partialorder %v1468_v49, 8.507059e+37  ;;  %v4484_v40 = vadd.f32 1.0, %v2600_v19 }
 0x1ae   : > { %2609 = vpow2.f32 %v2397_v9  ;;  %v4488_v4 = vadd.f32 %v5059_v34, %v5058_v32  ;;  %v4490_v42 = vpop.eup %2603  ;;  %v1642_v30 = vmul.f32 %v1427_v10, %v3962_v61  ;;  %v1476_v0 = vsub.f32 1.0, %v1475_v58  ;;  %1857 = vmatmul.f32.gmra.mxu1 %v1673_v50  ;;  %1987 = vmatmul.f32.gmra.mxu3 %v1673_v50 }
 0x1af   : > { %v4493_v47 = vadd.f32 1.0, %v2602_v52  ;;  %v866_v39 = vadd.f32 %v4356_v21, %v4354_v57  ;;  %v1463_v53 = vadd.f32 %v4358_v29, %v1462_v48  ;;  %vm1465_vm5 = vweird.f32 %v4358_v29  ;;  %v806_v10 = vpop.f32.mrf.mxu0  ;;  %v871_v48 = vpop.f32.mrf.mxu1 }
 0x1b0   : > { %v1491_v43 = vsub.f32 1.0, %v1490_v20  ;;  %v996_v3 = vadd.f32 %v4382_v41, %v4380_v14  ;;  %v4501_v2 = vpop.eup %2605  ;;  %v1643_v61 = vmul.f32 %v1442_v6, %v4003_v12  ;;  %vm1479_vm7 = vweird.f32 %v4328_v56  ;;  %vm4526_vm8 = vmor %vm1464_vm2, %vm1465_vm5 }
 0x1b1   : > { %v1483_v57 = vand.u32 2147483647, %v4328_v56  ;;  %v2398_v21 = vmul.f32 -1.442695, %v4475_v36  ;;  %v1452_v14 = vsel %vm4508_vm6, %v4325_v38, %v1448_v62  ;;  %v1505_v12 = vmul.f32 %v4490_v42, %v4394_v27 }
 0x1b2   : > { %2611 = vrcp.f32 %v4484_v40  ;;  %v2399_v7 = vmul.f32 -1.442695, %v4488_v4  ;;  %v2608_v41 = vpop.eup %2607  ;;  %v1477_v9 = vmul.f32 %v4414_v59, %v1476_v0  ;;  %v1485_v38 = vand.u32 2147483648, %v4328_v56 }
 0x1b3   : > { %2613 = vrcp.f32 %v4493_v47  ;;  %v1674_v19 = vmul.f32 %v1642_v30, %v866_v39  ;;  %v1467_v58 = vsel %vm4526_vm8, %v4358_v29, %v1463_v53  ;;  %v1492_v11 = vmul.f32 %v4428_v55, %v1491_v43  ;;  %v4547_v29 = vpop.f32.mrf.mxu2  ;;  %v1001_v62 = vpop.f32.mrf.mxu3 }
 0x1b4   : > { %v2610_v63 = vpop.eup %2609  ;;  %v1520_v35 = vmul.f32 %v4501_v2, %v4410_v1  ;;  %v1675_v52 = vmul.f32 %v1643_v61, %v996_v3  ;;  %v1457_v20 = vsel %vm4465_vm3, %v4408_v22, %v1452_v14  ;;  %vm1480_vm9 = vweird.f32 %v4414_v59 }
 0x1b5   : > { %vm4543_vm10 = vcmp.eq.f32.partialorder %v1483_v57, 8.507059e+37  ;;  %2615 = vpow2.f32 %v2398_v21  ;;  %v1498_v54 = vand.u32 2147483647, %v4337_v45  ;;  %v1506_v8 = vsub.f32 1.0, %v1505_v12  ;;  %1795 = vmatmul.f32.gmra.mxu0 %v1674_v19  ;;  %1925 = vmatmul.f32.gmra.mxu2 %v1674_v19  ;;  %vm4575_vm13 = vmor %vm1479_vm7, %vm1480_vm9 }
 0x1b6   : > { %v4550_v6 = vadd.f32 1.0, %v2608_v41  ;;  %2617 = vpow2.f32 %v2399_v7  ;;  %v1472_v28 = vsel %vm4480_vm4, %v1471_v51, %v1467_v58  ;;  %v1478_v22 = vadd.f32 %v4414_v59, %v1477_v9  ;;  %1860 = vmatmul.f32.gmra.mxu1 %v1675_v52  ;;  %1990 = vmatmul.f32.gmra.mxu3 %v1675_v52 }
 0x1b7   : > { %v4555_v32 = vadd.f32 1.0, %v2610_v63  ;;  %v869_v34 = vadd.f32 %v4450_v18, %v4448_v16  ;;  %v1493_v0 = vadd.f32 %v4428_v55, %v1492_v11  ;;  %vm1495_vm11 = vweird.f32 %v4428_v55  ;;  %v874_v19 = vpop.f32.mrf.mxu1 }
 0x1b8   : > { %v4559_v30 = vpop.eup %2611  ;;  %v1521_v39 = vsub.f32 1.0, %v1520_v35  ;;  %v999_v51 = vadd.f32 %v4460_v26, %v4458_v46  ;;  %v1644_v53 = vmul.f32 %v1457_v20, %v4076_v24  ;;  %v1486_v43 = vor.u32 1.1754944e-38, %v1485_v38  ;;  %v809_v38 = vpop.f32.mrf.mxu0 }
 0x1b9   : > { %v4565_v5 = vpop.eup %2613  ;;  %vm1494_vm12 = vweird.f32 %v4337_v45  ;;  %v1500_v16 = vand.u32 2147483648, %v4337_v45  ;;  %v1645_v18 = vmul.f32 %v1472_v28, %v4114_v25  ;;  %vm4579_vm14 = vcmp.eq.f32.partialorder %v1498_v54, 8.507059e+37 }
 0x1ba   : > { %v1507_v24 = vmul.f32 %v4490_v42, %v1506_v8  ;;  %2619 = vrcp.f32 %v4550_v6  ;;  %v1482_v25 = vsel %vm4575_vm13, %v4414_v59, %v1478_v22  ;;  %vm4590_vm15 = vmor %vm1494_vm12, %vm1495_vm11  ;;  %v1535_v26 = vmul.f32 %v4559_v30, %v4484_v40 }
 0x1bb   : > { %v2616_v45 = vpop.eup %2615  ;;  %2621 = vrcp.f32 %v4555_v32  ;;  %v1676_v61 = vmul.f32 %v1644_v53, %v869_v34  ;;  %v1497_v57 = vsel %vm4590_vm15, %v4428_v55, %v1493_v0  ;;  %v1522_v21 = vmul.f32 %v4501_v2, %v1521_v39  ;;  %v939_v52 = vpop.f32.mrf.mxu2 }
 0x1bc   : > { %v2618_v33 = vpop.eup %2617  ;;  %v1550_v59 = vmul.f32 %v4565_v5, %v4493_v47  ;;  %v1677_v14 = vmul.f32 %v1645_v18, %v999_v51  ;;  %v1501_v12 = vor.u32 1.1754944e-38, %v1500_v16  ;;  %vm1509_vm0 = vweird.f32 %v4394_v27  ;;  %v1004_v20 = vpop.f32.mrf.mxu3 }
 0x1bd   : > { %v1513_v7 = vand.u32 2147483647, %v4394_v27  ;;  %v1515_v41 = vand.u32 2147483648, %v4394_v27  ;;  %v1487_v49 = vsel %vm4543_vm10, %v1486_v43, %v1482_v25  ;;  %v1508_v9 = vadd.f32 %v4490_v42, %v1507_v24  ;;  %1798 = vmatmul.f32.gmra.mxu0 %v1676_v61  ;;  %1928 = vmatmul.f32.gmra.mxu2 %v1676_v61 }
 0x1be   : > { %vm1510_vm1 = vweird.f32 %v4490_v42  ;;  %v4610_v55 = vadd.f32 1.0, %v2616_v45  ;;  %v1502_v63 = vsel %vm4579_vm14, %v1501_v12, %v1497_v57  ;;  %v1536_v58 = vsub.f32 1.0, %v1535_v26  ;;  %1863 = vmatmul.f32.gmra.mxu1 %v1677_v14  ;;  %1993 = vmatmul.f32.gmra.mxu3 %v1677_v14 }
 0x1bf   : > { %v4614_v11 = vadd.f32 1.0, %v2618_v33  ;;  %v872_v35 = vadd.f32 %v871_v48, %v806_v10  ;;  %v1523_v54 = vadd.f32 %v4501_v2, %v1522_v21  ;;  %vm1525_vm2 = vweird.f32 %v4501_v2  ;;  %vm4628_vm3 = vmor %vm1509_vm0, %vm1510_vm1  ;;  %v877_v57 = vpop.f32.mrf.mxu1 }
 0x1c0   : > { %v4616_v50 = vpop.eup %2619  ;;  %v1551_v8 = vsub.f32 1.0, %v1550_v59  ;;  %v1002_v28 = vadd.f32 %v1001_v62, %v4547_v29  ;;  %v1646_v34 = vmul.f32 %v1487_v49, %v4171_v60  ;;  %v1516_v48 = vor.u32 1.1754944e-38, %v1515_v41  ;;  %v812_v33 = vpop.f32.mrf.mxu0 }
 0x1c1   : > { %v4621_v22 = vpop.eup %2621  ;;  %vm1524_vm4 = vweird.f32 %v4410_v1  ;;  %v1530_v0 = vand.u32 2147483648, %v4410_v1  ;;  %v1647_v29 = vmul.f32 %v1502_v63, %v4183_v15  ;;  %v1512_v60 = vsel %vm4628_vm3, %v4490_v42, %v1508_v9 }
 0x1c2   : > { %v1528_v62 = vand.u32 2147483647, %v4410_v1  ;;  %2623 = vrcp.f32 %v4610_v55  ;;  %vm4642_vm5 = vmor %vm1524_vm4, %vm1525_vm2  ;;  %v1537_v39 = vmul.f32 %v4559_v30, %v1536_v58  ;;  %v1565_v51 = vmul.f32 %v4616_v50, %v4550_v6 }
 0x1c3   : > { %2625 = vrcp.f32 %v4614_v11  ;;  %v1678_v15 = vmul.f32 %v1646_v34, %v872_v35  ;;  %v1527_v1 = vsel %vm4642_vm5, %v4501_v2, %v1523_v54  ;;  %v1552_v42 = vmul.f32 %v4565_v5, %v1551_v8  ;;  %v942_v41 = vpop.f32.mrf.mxu2 }
 0x1c4   : > { %v1580_v53 = vmul.f32 %v4621_v22, %v4555_v32  ;;  %v1679_v43 = vmul.f32 %v1647_v29, %v1002_v28  ;;  %vm1514_vm6 = vcmp.eq.f32.partialorder %v1513_v7, 8.507059e+37  ;;  %v1531_v16 = vor.u32 1.1754944e-38, %v1530_v0  ;;  %v1007_v49 = vpop.f32.mrf.mxu3 }
 0x1c5   : > { %vm1539_vm7 = vweird.f32 %v4484_v40  ;;  %v1517_v18 = vsel %vm1514_vm6, %v1516_v48, %v1512_v60  ;;  %vm1529_vm8 = vcmp.eq.f32.partialorder %v1528_v62, 8.507059e+37  ;;  %vm1540_vm9 = vweird.f32 %v4559_v30  ;;  %1801 = vmatmul.f32.gmra.mxu0 %v1678_v15  ;;  %1931 = vmatmul.f32.gmra.mxu2 %v1678_v15 }
 0x1c6   : > { %v1545_v3 = vand.u32 2147483648, %v4484_v40  ;;  %v1532_v46 = vsel %vm1529_vm8, %v1531_v16, %v1527_v1  ;;  %v1538_v24 = vadd.f32 %v4559_v30, %v1537_v39  ;;  %v1566_v2 = vsub.f32 1.0, %v1565_v51  ;;  %1866 = vmatmul.f32.gmra.mxu1 %v1679_v43  ;;  %1996 = vmatmul.f32.gmra.mxu3 %v1679_v43  ;;  %vm4675_vm11 = vmor %vm1539_vm7, %vm1540_vm9 }
 0x1c7   : > { %v875_v45 = vadd.f32 %v874_v19, %v809_v38  ;;  %v1553_v56 = vadd.f32 %v4565_v5, %v1552_v42  ;;  %vm1555_vm10 = vweird.f32 %v4565_v5  ;;  %v1581_v26 = vsub.f32 1.0, %v1580_v53  ;;  %v880_v1 = vpop.f32.mrf.mxu1 }
 0x1c8   : > { %v4660_v25 = vpop.eup %2623  ;;  %v1005_v61 = vadd.f32 %v1004_v20, %v939_v52  ;;  %v1648_v59 = vmul.f32 %v1517_v18, %v4234_v31  ;;  %v1543_v14 = vand.u32 2147483647, %v4484_v40  ;;  %v1558_v12 = vand.u32 2147483647, %v4493_v47 }
 0x1c9   : > { %v4664_v21 = vpop.eup %2625  ;;  %v1560_v7 = vand.u32 2147483648, %v4493_v47  ;;  %v1649_v9 = vmul.f32 %v1532_v46, %v4249_v44  ;;  %v1546_v31 = vor.u32 1.1754944e-38, %v1545_v3  ;;  %vm1554_vm12 = vweird.f32 %v4493_v47 }
 0x1ca   : > { %v1542_v19 = vsel %vm4675_vm11, %v4559_v30, %v1538_v24  ;;  %vm4685_vm13 = vmor %vm1554_vm12, %vm1555_vm10  ;;  %v1567_v44 = vmul.f32 %v4616_v50, %v1566_v2  ;;  %v1595_v40 = vmul.f32 %v4660_v25, %v4610_v55  ;;  %v1680_v58 = vmul.f32 %v1648_v59, %v875_v45 }
 0x1cb   : > { %v1557_v47 = vsel %vm4685_vm13, %v4565_v5, %v1553_v56  ;;  %v1582_v35 = vmul.f32 %v4621_v22, %v1581_v26  ;;  %v1610_v30 = vmul.f32 %v4664_v21, %v4614_v11  ;;  %v1681_v52 = vmul.f32 %v1649_v9, %v1005_v61  ;;  %v945_v53 = vpop.f32.mrf.mxu2 }
 0x1cc   : > { %vm1544_vm14 = vcmp.eq.f32.partialorder %v1543_v14, 8.507059e+37  ;;  %vm1559_vm15 = vcmp.eq.f32.partialorder %v1558_v12, 8.507059e+37  ;;  %v1561_v20 = vor.u32 1.1754944e-38, %v1560_v7  ;;  %vm1569_vm0 = vweird.f32 %v4550_v6  ;;  %v1010_v43 = vpop.f32.mrf.mxu3 }
 0x1cd   : > { %v1547_v54 = vsel %vm1544_vm14, %v1546_v31, %v1542_v19  ;;  %vm1570_vm1 = vweird.f32 %v4616_v50  ;;  %v1575_v8 = vand.u32 2147483648, %v4550_v6  ;;  %v1568_v34 = vadd.f32 %v4616_v50, %v1567_v44  ;;  %1804 = vmatmul.f32.gmra.mxu0 %v1680_v58  ;;  %1934 = vmatmul.f32.gmra.mxu2 %v1680_v58 }
 0x1ce   : > { %v1562_v28 = vsel %vm1559_vm15, %v1561_v20, %v1557_v47  ;;  %v1596_v5 = vsub.f32 1.0, %v1595_v40  ;;  %v878_v10 = vadd.f32 %v877_v57, %v812_v33  ;;  %v1583_v48 = vadd.f32 %v4621_v22, %v1582_v35  ;;  %1869 = vmatmul.f32.gmra.mxu1 %v1681_v52  ;;  %1999 = vmatmul.f32.gmra.mxu3 %v1681_v52  ;;  %vm4712_vm3 = vmor %vm1569_vm0, %vm1570_vm1 }
 0x1cf   : > { %vm1585_vm2 = vweird.f32 %v4621_v22  ;;  %v1611_v0 = vsub.f32 1.0, %v1610_v30  ;;  %v1008_v29 = vadd.f32 %v1007_v49, %v942_v41  ;;  %v1650_v60 = vmul.f32 %v1547_v54, %v4323_v23  ;;  %v815_v23 = vpop.f32.mrf.mxu0 }
 0x1d0   : > { %v1573_v62 = vand.u32 2147483647, %v4550_v6  ;;  %v1590_v27 = vand.u32 2147483648, %v4555_v32  ;;  %v1651_v39 = vmul.f32 %v1562_v28, %v4332_v13  ;;  %vm1584_vm4 = vweird.f32 %v4555_v32 }
 0x1d1   : > { %v1588_v15 = vand.u32 2147483647, %v4555_v32  ;;  %v1572_v42 = vsel %vm4712_vm3, %v4616_v50, %v1568_v34  ;;  %vm1586_vm5 = vmor %vm1584_vm4, %vm1585_vm2  ;;  %v1597_v13 = vmul.f32 %v4660_v25, %v1596_v5  ;;  %v1682_v6 = vmul.f32 %v1650_v60, %v878_v10 }
 0x1d2   : > { %v1576_v16 = vor.u32 1.1754944e-38, %v1575_v8  ;;  %v1587_v18 = vsel %vm1586_vm5, %v4621_v22, %v1583_v48  ;;  %v1612_v3 = vmul.f32 %v4664_v21, %v1611_v0  ;;  %v1683_v32 = vmul.f32 %v1651_v39, %v1008_v29 }
 0x1d3   : > { %vm1574_vm6 = vcmp.eq.f32.partialorder %v1573_v62, 8.507059e+37  ;;  %v1591_v46 = vor.u32 1.1754944e-38, %v1590_v27  ;;  %vm1589_vm7 = vcmp.eq.f32.partialorder %v1588_v15, 8.507059e+37  ;;  %vm1599_vm8 = vweird.f32 %v4610_v55  ;;  %v948_v31 = vpop.f32.mrf.mxu2 }
 0x1d4   : > { %v1577_v24 = vsel %vm1574_vm6, %v1576_v16, %v1572_v42  ;;  %v1598_v2 = vadd.f32 %v4660_v25, %v1597_v13  ;;  %vm1600_vm9 = vweird.f32 %v4660_v25  ;;  %v881_v45 = vadd.f32 %v880_v1, %v815_v23  ;;  %v1013_v19 = vpop.f32.mrf.mxu3 }
 0x1d5   : > { %v1592_v50 = vsel %vm1589_vm7, %v1591_v46, %v1587_v18  ;;  %1807 = vmatmul.f32.gmra.mxu0 %v1682_v6  ;;  %1937 = vmatmul.f32.gmra.mxu2 %v1682_v6  ;;  %v1605_v56 = vand.u32 2147483648, %v4610_v55  ;;  %v1613_v22 = vadd.f32 %v4664_v21, %v1612_v3  ;;  %vm1615_vm10 = vweird.f32 %v4664_v21  ;;  %vm4738_vm11 = vmor %vm1599_vm8, %vm1600_vm9 }
 0x1d6   : > { %1872 = vmatmul.f32.gmra.mxu1 %v1683_v32  ;;  %v1011_v26 = vadd.f32 %v1010_v43, %v945_v53  ;;  %v1652_v61 = vmul.f32 %v1577_v24, %v4398_v37  ;;  %v1603_v33 = vand.u32 2147483647, %v4610_v55  ;;  %v1620_v57 = vand.u32 2147483648, %v4614_v11  ;;  %2002 = vmatmul.f32.gmra.mxu3 %v1683_v32  ;;  %v883_v55 = vpop.f32.mrf.mxu1 }
 0x1d7   : > { %v1653_v59 = vmul.f32 %v1592_v50, %v4405_v17  ;;  %vm1614_vm12 = vweird.f32 %v4614_v11  ;;  %v1618_v12 = vand.u32 2147483647, %v4614_v11  ;;  %v1602_v37 = vsel %vm4738_vm11, %v4660_v25, %v1598_v2  ;;  %v818_v9 = vpop.f32.mrf.mxu0 }
 0x1d8   : > { %vm1616_vm13 = vmor %vm1614_vm12, %vm1615_vm10  ;;  %v1684_v7 = vmul.f32 %v1652_v61, %v881_v45  ;;  %v1606_v41 = vor.u32 1.1754944e-38, %v1605_v56  ;;  %vm1604_vm14 = vcmp.eq.f32.partialorder %v1603_v33, 8.507059e+37  ;;  %v1621_v38 = vor.u32 1.1754944e-38, %v1620_v57 }
 0x1d9   : > { %v1617_v49 = vsel %vm1616_vm13, %v4664_v21, %v1613_v22  ;;  %v1685_v17 = vmul.f32 %v1653_v59, %v1011_v26  ;;  %vm1619_vm15 = vcmp.eq.f32.partialorder %v1618_v12, 8.507059e+37  ;;  %v884_v11 = vadd.f32 %v883_v55, %v818_v9 }
 0x1da   : > { %v1607_v63 = vsel %vm1604_vm14, %v1606_v41, %v1602_v37  ;;  %v1622_v44 = vsel %vm1619_vm15, %v1621_v38, %v1617_v49  ;;  %v1014_v25 = vadd.f32 %v1013_v19, %v948_v31 }
 0x1db   : > { %v1654_v40 = vmul.f32 %v1607_v63, %v4475_v36  ;;  %v1655_v21 = vmul.f32 %v1622_v44, %v4488_v4 }
 0x1dd   : > { %1810 = vmatmul.f32.gmra.mxu0 %v1684_v7  ;;  %1940 = vmatmul.f32.gmra.mxu2 %v1684_v7  ;;  %v1686_v58 = vmul.f32 %v1654_v40, %v884_v11  ;;  %v1687_v47 = vmul.f32 %v1655_v21, %v1014_v25 }
 0x1de   : > { %1875 = vmatmul.f32.gmra.mxu1 %v1685_v17  ;;  %2005 = vmatmul.f32.gmra.mxu3 %v1685_v17 }
 0x1e5   : > { %1813 = vmatmul.f32.gmra.mxu0 %v1686_v58  ;;  %1943 = vmatmul.f32.gmra.mxu2 %v1686_v58 }
 0x1e6   : > { %1878 = vmatmul.f32.gmra.mxu1 %v1687_v47  ;;  %2008 = vmatmul.f32.gmra.mxu3 %v1687_v47 }
 0x1e7   : > { %v1769_v35 = vpop.f32.mrf.mxu0 }
 0x1e8   : > { %v1834_v30 = vpop.f32.mrf.mxu1 }
 0x1e9   : > { %v4750_v52 = vadd.f32 %v1834_v30, %v1769_v35 }
 0x1ed   : > { %v1899_v20 = vpop.f32.mrf.mxu2 }
 0x1ef   : > { %v1772_v54 = vpop.f32.mrf.mxu0  ;;  %v1964_v8 = vpop.f32.mrf.mxu3 }
 0x1f0   : > { %v4752_v28 = vadd.f32 %v1964_v8, %v1899_v20  ;;  %v1837_v34 = vpop.f32.mrf.mxu1 }
 0x1f1   : > { %v4754_v36 = vadd.f32 %v1837_v34, %v1772_v54 }
 0x1f5   : > { %v1902_v5 = vpop.f32.mrf.mxu2 }
 0x1f7   : > { %v1775_v4 = vpop.f32.mrf.mxu0  ;;  %v1967_v10 = vpop.f32.mrf.mxu3 }
 0x1f8   : > { %v4756_v48 = vadd.f32 %v1967_v10, %v1902_v5  ;;  %v1840_v0 = vpop.f32.mrf.mxu1 }
 0x1f9   : > { %v4758_v29 = vadd.f32 %v1840_v0, %v1775_v4 }
 0x1fd   : > { %v1905_v60 = vpop.f32.mrf.mxu2 }
 0x1ff   : > { %v1778_v62 = vpop.f32.mrf.mxu0  ;;  %v1970_v27 = vpop.f32.mrf.mxu3 }
 0x200   : > { %v4760_v39 = vadd.f32 %v1970_v27, %v1905_v60  ;;  %v1843_v51 = vpop.f32.mrf.mxu1 }
 0x201   : > { %v4762_v15 = vadd.f32 %v1843_v51, %v1778_v62 }
 0x205   : > { %v1908_v23 = vpop.f32.mrf.mxu2 }
 0x207   : > { %v1781_v1 = vpop.f32.mrf.mxu0  ;;  %v1973_v42 = vpop.f32.mrf.mxu3 }
 0x208   : > { %v4764_v13 = vadd.f32 %v1973_v42, %v1908_v23  ;;  %v1846_v6 = vpop.f32.mrf.mxu1 }
 0x209   : > { %v4766_v53 = vadd.f32 %v1846_v6, %v1781_v1 }
 0x20d   : > { %v1911_v43 = vpop.f32.mrf.mxu2 }
 0x20f   : > { %v1784_v16 = vpop.f32.mrf.mxu0  ;;  %v1976_v18 = vpop.f32.mrf.mxu3 }
 0x210   : > { %v4768_v3 = vadd.f32 %v1976_v18, %v1911_v43 }
 0x211   : > { %v1849_v32 = vpop.f32.mrf.mxu1 }
 0x212   : > { %v4770_v46 = vadd.f32 %v1849_v32, %v1784_v16 }
 0x215   : > { %v1914_v24 = vpop.f32.mrf.mxu2 }
 0x217   : > { %v1979_v2 = vpop.f32.mrf.mxu3 }
 0x218   : > { %v1787_v50 = vpop.f32.mrf.mxu0  ;;  %v4772_v45 = vadd.f32 %v1979_v2, %v1914_v24 }
 0x219   : > { %v1852_v56 = vpop.f32.mrf.mxu1 }
 0x21a   : > { %v4774_v22 = vadd.f32 %v1852_v56, %v1787_v50 }
 0x21e   : > { %v1917_v26 = vpop.f32.mrf.mxu2 }
 0x21f   : > { %v1982_v33 = vpop.f32.mrf.mxu3 }
 0x220   : > { %v4776_v57 = vadd.f32 %v1982_v33, %v1917_v26 }
 0x221   : > { %v1790_v61 = vpop.f32.mrf.mxu0 }
 0x222   : > { %v1855_v59 = vpop.f32.mrf.mxu1 }
 0x223   : > { %v4778_v14 = vadd.f32 %v1855_v59, %v1790_v61 }
 0x227   : > { %v1920_v12 = vpop.f32.mrf.mxu2 }
 0x228   : > { %v1985_v7 = vpop.f32.mrf.mxu3 }
 0x229   : > { %v1793_v37 = vpop.f32.mrf.mxu0  ;;  %v4780_v41 = vadd.f32 %v1985_v7, %v1920_v12 }
 0x22b   : > { %v1858_v49 = vpop.f32.mrf.mxu1 }
 0x22c   : > { %v4782_v17 = vadd.f32 %v1858_v49, %v1793_v37 }
 0x22f   : > { %v1923_v9 = vpop.f32.mrf.mxu2 }
 0x231   : > { %v1988_v38 = vpop.f32.mrf.mxu3 }
 0x232   : > { %v1796_v55 = vpop.f32.mrf.mxu0  ;;  %v4784_v31 = vadd.f32 %v1988_v38, %v1923_v9 }
 0x233   : > { %v1861_v19 = vpop.f32.mrf.mxu1 }
 0x234   : > { %v4786_v63 = vadd.f32 %v1861_v19, %v1796_v55 }
 0x238   : > { %v1926_v44 = vpop.f32.mrf.mxu2 }
 0x239   : > { %v1991_v25 = vpop.f32.mrf.mxu3 }
 0x23a   : > { %v1799_v11 = vpop.f32.mrf.mxu0  ;;  %v4788_v40 = vadd.f32 %v1991_v25, %v1926_v44 }
 0x23b   : > { %v1864_v21 = vpop.f32.mrf.mxu1 }
 0x23c   : > { %v4790_v58 = vadd.f32 %v1864_v21, %v1799_v11 }
 0x240   : > { %v1929_v47 = vpop.f32.mrf.mxu2 }
 0x241   : > { %v1994_v30 = vpop.f32.mrf.mxu3 }
 0x242   : > { %v1802_v35 = vpop.f32.mrf.mxu0  ;;  %v4792_v20 = vadd.f32 %v1994_v30, %v1929_v47 }
 0x243   : > { %v1867_v54 = vpop.f32.mrf.mxu1 }
 0x244   : > { %v4794_v8 = vadd.f32 %v1867_v54, %v1802_v35 }
 0x248   : > { %v1932_v34 = vpop.f32.mrf.mxu2 }
 0x249   : > { %v1997_v4 = vpop.f32.mrf.mxu3 }
 0x24a   : > { %v1805_v5 = vpop.f32.mrf.mxu0  ;;  %v4796_v10 = vadd.f32 %v1997_v4, %v1932_v34 }
 0x24b   : > { %v1870_v0 = vpop.f32.mrf.mxu1 }
 0x24c   : > { %v4798_v60 = vadd.f32 %v1870_v0, %v1805_v5 }
 0x250   : > { %v1935_v62 = vpop.f32.mrf.mxu2 }
 0x251   : > { %v2000_v51 = vpop.f32.mrf.mxu3 }
 0x252   : > { %v1808_v27 = vpop.f32.mrf.mxu0  ;;  %v4800_v23 = vadd.f32 %v2000_v51, %v1935_v62 }
 0x253   : > { %v1873_v1 = vpop.f32.mrf.mxu1 }
 0x254   : > { %v4802_v42 = vadd.f32 %v1873_v1, %v1808_v27 }
 0x258   : > { %v1938_v6 = vpop.f32.mrf.mxu2 }
 0x259   : > { %v2003_v16 = vpop.f32.mrf.mxu3 }
 0x25a   : > { %v1811_v43 = vpop.f32.mrf.mxu0  ;;  %v4804_v18 = vadd.f32 %v2003_v16, %v1938_v6 }
 0x25b   : > { %v1876_v32 = vpop.f32.mrf.mxu1 }
 0x25c   : > { %v4806_v24 = vadd.f32 %v1876_v32, %v1811_v43 }
 0x260   : > { %v1941_v50 = vpop.f32.mrf.mxu2 }
 0x261   : > { %v2006_v2 = vpop.f32.mrf.mxu3 }
 0x262   : > { %v1814_v56 = vpop.f32.mrf.mxu0  ;;  %v4808_v26 = vadd.f32 %v2006_v2, %v1941_v50 }
 0x263   : > { %v1879_v61 = vpop.f32.mrf.mxu1 }
 0x264   : > { %v4810_v33 = vadd.f32 %v1879_v61, %v1814_v56 }
 0x266   : > { %2015 = sbr.rel (%p2400_p1) target bundleno = 651 (0x28b), region = 56 }
 0x268   : > { %v1944_v59 = vpop.f32.mrf.mxu2 }
 0x269   : > { %v2009_v12 = vpop.f32.mrf.mxu3 }
 0x26a   : > { %v4812_v37 = vadd.f32 %v2009_v12, %v1944_v59 }
 0x26b   : > { %2016 = vst [vmem:[#allocation2 + $0xb0] sm:$0xff] %v4750_v52 }
 0x26c   : > { %2017 = vst [vmem:[#allocation2] sm:$0xff] %v4752_v28 }
 0x26d   : > { %2018 = vst [vmem:[#allocation2 + $0xd8] sm:$0xff] %v4754_v36 }
 0x26e   : > { %2019 = vst [vmem:[#allocation2 + $0x18] sm:$0xff] %v4756_v48 }
 0x26f   : > { %2020 = vst [vmem:[#allocation2 + $0x50] sm:$0xff] %v4758_v29 }
 0x270   : > { %2021 = vst [vmem:[#allocation2 + $0x68] sm:$0xff] %v4760_v39 }
 0x271   : > { %2022 = vst [vmem:[#allocation2 + $0x30] sm:$0xff] %v4762_v15 }
 0x272   : > { %2023 = vst [vmem:[#allocation2 + $0x48] sm:$0xff] %v4764_v13 }
 0x273   : > { %2024 = vst [vmem:[#allocation2 + $0x80] sm:$0xff] %v4766_v53 }
 0x274   : > { %2025 = vst [vmem:[#allocation2 + $0x88] sm:$0xff] %v4768_v3 }
 0x275   : > { %2026 = vst [vmem:[#allocation2 + $0xe8] sm:$0xff] %v4770_v46 }
 0x276   : > { %2027 = vst [vmem:[#allocation2 + $0xb8] sm:$0xff] %v4772_v45 }
 0x277   : > { %2028 = vst [vmem:[#allocation2 + $0x60] sm:$0xff] %v4774_v22 }
 0x278   : > { %2029 = vst [vmem:[#allocation2 + $0xf0] sm:$0xff] %v4776_v57 }
 0x279   : > { %2030 = vst [vmem:[#allocation2 + $0x8] sm:$0xff] %v4778_v14 }
 0x27a   : > { %2031 = vst [vmem:[#allocation2 + $0x78] sm:$0xff] %v4780_v41 }
 0x27b   : > { %2032 = vst [vmem:[#allocation2 + $0x38] sm:$0xff] %v4782_v17 }
 0x27c   : > { %2033 = vst [vmem:[#allocation2 + $0x58] sm:$0xff] %v4784_v31 }
 0x27d   : > { %2034 = vst [vmem:[#allocation2 + $0x40] sm:$0xff] %v4786_v63 }
 0x27e   : > { %2035 = vst [vmem:[#allocation2 + $0xc8] sm:$0xff] %v4788_v40 }
 0x27f   : > { %2036 = vst [vmem:[#allocation2 + $0xe0] sm:$0xff] %v4790_v58 }
 0x280   : > { %2037 = vst [vmem:[#allocation2 + $0x90] sm:$0xff] %v4792_v20 }
 0x281   : > { %2038 = vst [vmem:[#allocation2 + $0x70] sm:$0xff] %v4794_v8 }
 0x282   : > { %2039 = vst [vmem:[#allocation2 + $0xc0] sm:$0xff] %v4796_v10 }
 0x283   : > { %2040 = vst [vmem:[#allocation2 + $0xa8] sm:$0xff] %v4798_v60 }
 0x284   : > { %2041 = vst [vmem:[#allocation2 + $0xd0] sm:$0xff] %v4800_v23 }
 0x285   : > { %2042 = vst [vmem:[#allocation2 + $0x10] sm:$0xff] %v4802_v42 }
 0x286   : > { %2043 = vst [vmem:[#allocation2 + $0x28] sm:$0xff] %v4804_v18 }
 0x287   : > { %2044 = vst [vmem:[#allocation2 + $0xa0] sm:$0xff] %v4806_v24 }
 0x288   : > { %2045 = vst [vmem:[#allocation2 + $0xf8] sm:$0xff] %v4808_v26 }
 0x289   : > { %2046 = vst [vmem:[#allocation2 + $0x20] sm:$0xff] %v4810_v33 }
 0x28a   : > { %2047 = vst [vmem:[#allocation2 + $0x98] sm:$0xff] %v4812_v37 }
 0x28b PF: > { %p2401_p2 = scmp.eq.s32.totalorder %s2829_s18, 0 }
 0x28d   : > { %2051 = sbr.rel (%p2401_p2) target bundleno = 693 (0x2b5), region = 60 }
 0x292   : > { %v2052_v7 = vld [vmem:[#allocation2 + $0xb0] sm:$0xff]  ;;  %v2053_v49 = vld [vmem:[#allocation2] sm:$0xff]  ;;  %v2054_v9 = vld [vmem:[#allocation2 + $0xd8] sm:$0xff] }
 0x293   : > { %v2084_v55 = vadd.f32 %v2052_v7, %v4750_v52  ;;  %v2085_v38 = vadd.f32 %v2053_v49, %v4752_v28  ;;  %v2086_v19 = vadd.f32 %v2054_v9, %v4754_v36  ;;  %v2055_v44 = vld [vmem:[#allocation2 + $0x18] sm:$0xff]  ;;  %v2056_v11 = vld [vmem:[#allocation2 + $0x50] sm:$0xff]  ;;  %v2057_v25 = vld [vmem:[#allocation2 + $0x68] sm:$0xff] }
 0x294   : > { %v2087_v21 = vadd.f32 %v2055_v44, %v4756_v48  ;;  %v2058_v47 = vld [vmem:[#allocation2 + $0x30] sm:$0xff]  ;;  %v2088_v35 = vadd.f32 %v2056_v11, %v4758_v29  ;;  %v2059_v30 = vld [vmem:[#allocation2 + $0x48] sm:$0xff]  ;;  %v2089_v54 = vadd.f32 %v2057_v25, %v4760_v39  ;;  %v2060_v34 = vld [vmem:[#allocation2 + $0x80] sm:$0xff] }
 0x295   : > { %2116 = vst [vmem:[#allocation2 + $0xb0] sm:$0xff] %v2084_v55  ;;  %v2090_v52 = vadd.f32 %v2058_v47, %v4762_v15  ;;  %v2061_v28 = vld [vmem:[#allocation2 + $0x88] sm:$0xff]  ;;  %v2091_v36 = vadd.f32 %v2059_v30, %v4764_v13  ;;  %v2092_v48 = vadd.f32 %v2060_v34, %v4766_v53  ;;  %v2063_v4 = vld [vmem:[#allocation2 + $0xb8] sm:$0xff]  ;;  %v2064_v0 = vld [vmem:[#allocation2 + $0x60] sm:$0xff] }
 0x296   : > { %2117 = vst [vmem:[#allocation2] sm:$0xff] %v2085_v38  ;;  %v2062_v5 = vld [vmem:[#allocation2 + $0xe8] sm:$0xff]  ;;  %v2093_v29 = vadd.f32 %v2061_v28, %v4768_v3  ;;  %v2065_v62 = vld [vmem:[#allocation2 + $0xf0] sm:$0xff]  ;;  %v2095_v15 = vadd.f32 %v2063_v4, %v4772_v45  ;;  %v2096_v13 = vadd.f32 %v2064_v0, %v4774_v22  ;;  %v2067_v51 = vld [vmem:[#allocation2 + $0x78] sm:$0xff] }
 0x297   : > { %2118 = vst [vmem:[#allocation2 + $0xd8] sm:$0xff] %v2086_v19  ;;  %v2094_v39 = vadd.f32 %v2062_v5, %v4770_v46  ;;  %v2066_v27 = vld [vmem:[#allocation2 + $0x8] sm:$0xff]  ;;  %v2097_v53 = vadd.f32 %v2065_v62, %v4776_v57  ;;  %v2068_v1 = vld [vmem:[#allocation2 + $0x38] sm:$0xff]  ;;  %v2099_v46 = vadd.f32 %v2067_v51, %v4780_v41  ;;  %v2070_v43 = vld [vmem:[#allocation2 + $0x40] sm:$0xff] }
 0x298   : > { %2119 = vst [vmem:[#allocation2 + $0x18] sm:$0xff] %v2087_v21  ;;  %v2098_v3 = vadd.f32 %v2066_v27, %v4778_v14  ;;  %v2069_v6 = vld [vmem:[#allocation2 + $0x58] sm:$0xff]  ;;  %v2100_v45 = vadd.f32 %v2068_v1, %v4782_v17  ;;  %v2071_v16 = vld [vmem:[#allocation2 + $0xc8] sm:$0xff]  ;;  %v2072_v32 = vld [vmem:[#allocation2 + $0xe0] sm:$0xff]  ;;  %v2102_v57 = vadd.f32 %v2070_v43, %v4786_v63 }
 0x299   : > { %2120 = vst [vmem:[#allocation2 + $0x50] sm:$0xff] %v2088_v35  ;;  %v2101_v22 = vadd.f32 %v2069_v6, %v4784_v31  ;;  %v2073_v50 = vld [vmem:[#allocation2 + $0x90] sm:$0xff]  ;;  %v2103_v14 = vadd.f32 %v2071_v16, %v4788_v40  ;;  %v2104_v41 = vadd.f32 %v2072_v32, %v4790_v58  ;;  %v2075_v56 = vld [vmem:[#allocation2 + $0xc0] sm:$0xff]  ;;  %v2076_v61 = vld [vmem:[#allocation2 + $0xa8] sm:$0xff] }
 0x29a   : > { %2121 = vst [vmem:[#allocation2 + $0x68] sm:$0xff] %v2089_v54  ;;  %v2074_v2 = vld [vmem:[#allocation2 + $0x70] sm:$0xff]  ;;  %v2105_v17 = vadd.f32 %v2073_v50, %v4792_v20  ;;  %v2107_v63 = vadd.f32 %v2075_v56, %v4796_v10  ;;  %v2108_v40 = vadd.f32 %v2076_v61, %v4798_v60  ;;  %v2079_v7 = vld [vmem:[#allocation2 + $0x28] sm:$0xff]  ;;  %v2080_v49 = vld [vmem:[#allocation2 + $0xa0] sm:$0xff] }
 0x29b   : > { %2122 = vst [vmem:[#allocation2 + $0x30] sm:$0xff] %v2090_v52  ;;  %v2106_v31 = vadd.f32 %v2074_v2, %v4794_v8  ;;  %v2077_v59 = vld [vmem:[#allocation2 + $0xd0] sm:$0xff]  ;;  %v2081_v9 = vld [vmem:[#allocation2 + $0xf8] sm:$0xff]  ;;  %v2111_v8 = vadd.f32 %v2079_v7, %v4804_v18  ;;  %v2082_v55 = vld [vmem:[#allocation2 + $0x20] sm:$0xff]  ;;  %v2112_v10 = vadd.f32 %v2080_v49, %v4806_v24 }
 0x29c   : > { %2123 = vst [vmem:[#allocation2 + $0x48] sm:$0xff] %v2091_v36  ;;  %v2078_v12 = vld [vmem:[#allocation2 + $0x10] sm:$0xff]  ;;  %v2109_v58 = vadd.f32 %v2077_v59, %v4800_v23  ;;  %v2083_v38 = vld [vmem:[#allocation2 + $0x98] sm:$0xff]  ;;  %v2113_v60 = vadd.f32 %v2081_v9, %v4808_v26  ;;  %v2114_v19 = vadd.f32 %v2082_v55, %v4810_v33 }
 0x29d   : > { %2124 = vst [vmem:[#allocation2 + $0x80] sm:$0xff] %v2092_v48  ;;  %v2110_v20 = vadd.f32 %v2078_v12, %v4802_v42  ;;  %v2115_v23 = vadd.f32 %v2083_v38, %v4812_v37 }
 0x29e   : > { %2125 = vst [vmem:[#allocation2 + $0x88] sm:$0xff] %v2093_v29 }
 0x29f   : > { %2126 = vst [vmem:[#allocation2 + $0xe8] sm:$0xff] %v2094_v39 }
 0x2a0   : > { %2127 = vst [vmem:[#allocation2 + $0xb8] sm:$0xff] %v2095_v15 }
 0x2a1   : > { %2128 = vst [vmem:[#allocation2 + $0x60] sm:$0xff] %v2096_v13 }
 0x2a2   : > { %2129 = vst [vmem:[#allocation2 + $0xf0] sm:$0xff] %v2097_v53 }
 0x2a3   : > { %2130 = vst [vmem:[#allocation2 + $0x8] sm:$0xff] %v2098_v3 }
 0x2a4   : > { %2131 = vst [vmem:[#allocation2 + $0x78] sm:$0xff] %v2099_v46 }
 0x2a5   : > { %2132 = vst [vmem:[#allocation2 + $0x38] sm:$0xff] %v2100_v45 }
 0x2a6   : > { %2133 = vst [vmem:[#allocation2 + $0x58] sm:$0xff] %v2101_v22 }
 0x2a7   : > { %2134 = vst [vmem:[#allocation2 + $0x40] sm:$0xff] %v2102_v57 }
 0x2a8   : > { %2135 = vst [vmem:[#allocation2 + $0xc8] sm:$0xff] %v2103_v14 }
 0x2a9   : > { %2136 = vst [vmem:[#allocation2 + $0xe0] sm:$0xff] %v2104_v41 }
 0x2aa   : > { %2137 = vst [vmem:[#allocation2 + $0x90] sm:$0xff] %v2105_v17 }
 0x2ab   : > { %2138 = vst [vmem:[#allocation2 + $0x70] sm:$0xff] %v2106_v31 }
 0x2ac   : > { %2139 = vst [vmem:[#allocation2 + $0xc0] sm:$0xff] %v2107_v63 }
 0x2ad   : > { %2140 = vst [vmem:[#allocation2 + $0xa8] sm:$0xff] %v2108_v40 }
 0x2ae   : > { %2141 = vst [vmem:[#allocation2 + $0xd0] sm:$0xff] %v2109_v58 }
 0x2af   : > { %2142 = vst [vmem:[#allocation2 + $0x10] sm:$0xff] %v2110_v20 }
 0x2b0   : > { %2143 = vst [vmem:[#allocation2 + $0x28] sm:$0xff] %v2111_v8 }
 0x2b1   : > { %2144 = vst [vmem:[#allocation2 + $0xa0] sm:$0xff] %v2112_v10 }
 0x2b2   : > { %2145 = vst [vmem:[#allocation2 + $0xf8] sm:$0xff] %v2113_v60 }
 0x2b3   : > { %2146 = vst [vmem:[#allocation2 + $0x20] sm:$0xff] %v2114_v19 }
 0x2b4   : > { %2147 = vst [vmem:[#allocation2 + $0x98] sm:$0xff] %v2115_v23 }
 0x2b5 PF: > { %p2402_p3 = scmp.ne.s32.totalorder %s2829_s18, 1 }
 0x2b7   : > { %2151 = sbr.rel (%p2402_p3) target bundleno = 733 (0x2dd), region = 64 }
 0x2bc   : > { %v2152_v42 = vld [vmem:[#allocation2 + $0xb0] sm:$0xff]  ;;  %v2153_v18 = vld [vmem:[#allocation2] sm:$0xff]  ;;  %v2154_v24 = vld [vmem:[#allocation2 + $0xd8] sm:$0xff] }
 0x2bd   : > { %2184 = vst [vmem:[#allocation11] sm:$0xff] %v2152_v42  ;;  %v2155_v44 = vld [vmem:[#allocation2 + $0x18] sm:$0xff]  ;;  %v2156_v26 = vld [vmem:[#allocation2 + $0x50] sm:$0xff]  ;;  %v2157_v33 = vld [vmem:[#allocation2 + $0x68] sm:$0xff] }
 0x2be   : > { %2185 = vst [vmem:[#allocation11 + $0x8] sm:$0xff] %v2153_v18  ;;  %v2158_v11 = vld [vmem:[#allocation2 + $0x30] sm:$0xff]  ;;  %v2159_v37 = vld [vmem:[#allocation2 + $0x48] sm:$0xff]  ;;  %v2160_v25 = vld [vmem:[#allocation2 + $0x80] sm:$0xff] }
 0x2bf   : > { %2186 = vst [vmem:[#allocation11 + $0x10] sm:$0xff] %v2154_v24  ;;  %v2161_v21 = vld [vmem:[#allocation2 + $0x88] sm:$0xff]  ;;  %v2163_v35 = vld [vmem:[#allocation2 + $0xb8] sm:$0xff]  ;;  %v2164_v30 = vld [vmem:[#allocation2 + $0x60] sm:$0xff] }
 0x2c0   : > { %2187 = vst [vmem:[#allocation11 + $0x18] sm:$0xff] %v2155_v44  ;;  %v2162_v47 = vld [vmem:[#allocation2 + $0xe8] sm:$0xff]  ;;  %v2165_v54 = vld [vmem:[#allocation2 + $0xf0] sm:$0xff]  ;;  %v2167_v52 = vld [vmem:[#allocation2 + $0x78] sm:$0xff] }
 0x2c1   : > { %2188 = vst [vmem:[#allocation11 + $0x20] sm:$0xff] %v2156_v26  ;;  %v2166_v34 = vld [vmem:[#allocation2 + $0x8] sm:$0xff]  ;;  %v2168_v28 = vld [vmem:[#allocation2 + $0x38] sm:$0xff]  ;;  %v2170_v5 = vld [vmem:[#allocation2 + $0x40] sm:$0xff] }
 0x2c2   : > { %2189 = vst [vmem:[#allocation11 + $0x28] sm:$0xff] %v2157_v33  ;;  %v2169_v36 = vld [vmem:[#allocation2 + $0x58] sm:$0xff]  ;;  %v2171_v48 = vld [vmem:[#allocation2 + $0xc8] sm:$0xff]  ;;  %v2172_v4 = vld [vmem:[#allocation2 + $0xe0] sm:$0xff] }
 0x2c3   : > { %2190 = vst [vmem:[#allocation11 + $0x30] sm:$0xff] %v2158_v11  ;;  %v2173_v29 = vld [vmem:[#allocation2 + $0x90] sm:$0xff]  ;;  %v2175_v39 = vld [vmem:[#allocation2 + $0xc0] sm:$0xff]  ;;  %v2176_v62 = vld [vmem:[#allocation2 + $0xa8] sm:$0xff] }
 0x2c4   : > { %2191 = vst [vmem:[#allocation11 + $0x38] sm:$0xff] %v2159_v37  ;;  %v2174_v0 = vld [vmem:[#allocation2 + $0x70] sm:$0xff]  ;;  %v2179_v13 = vld [vmem:[#allocation2 + $0x28] sm:$0xff]  ;;  %v2180_v51 = vld [vmem:[#allocation2 + $0xa0] sm:$0xff] }
 0x2c5   : > { %2192 = vst [vmem:[#allocation11 + $0x40] sm:$0xff] %v2160_v25  ;;  %v2177_v15 = vld [vmem:[#allocation2 + $0xd0] sm:$0xff]  ;;  %v2181_v53 = vld [vmem:[#allocation2 + $0xf8] sm:$0xff]  ;;  %v2182_v1 = vld [vmem:[#allocation2 + $0x20] sm:$0xff] }
 0x2c6   : > { %2193 = vst [vmem:[#allocation11 + $0x48] sm:$0xff] %v2161_v21  ;;  %v2178_v27 = vld [vmem:[#allocation2 + $0x10] sm:$0xff]  ;;  %v2183_v3 = vld [vmem:[#allocation2 + $0x98] sm:$0xff] }
 0x2c7   : > { %2194 = vst [vmem:[#allocation11 + $0x50] sm:$0xff] %v2162_v47 }
 0x2c8   : > { %2195 = vst [vmem:[#allocation11 + $0x58] sm:$0xff] %v2163_v35 }
 0x2c9   : > { %2196 = vst [vmem:[#allocation11 + $0x60] sm:$0xff] %v2164_v30 }
 0x2ca   : > { %2197 = vst [vmem:[#allocation11 + $0x68] sm:$0xff] %v2165_v54 }
 0x2cb   : > { %2198 = vst [vmem:[#allocation11 + $0x70] sm:$0xff] %v2166_v34 }
 0x2cc   : > { %2199 = vst [vmem:[#allocation11 + $0x78] sm:$0xff] %v2167_v52 }
 0x2cd   : > { %2200 = vst [vmem:[#allocation11 + $0x80] sm:$0xff] %v2168_v28 }
 0x2ce   : > { %2201 = vst [vmem:[#allocation11 + $0x88] sm:$0xff] %v2169_v36 }
 0x2cf   : > { %2202 = vst [vmem:[#allocation11 + $0x90] sm:$0xff] %v2170_v5 }
 0x2d0   : > { %2203 = vst [vmem:[#allocation11 + $0x98] sm:$0xff] %v2171_v48 }
 0x2d1   : > { %2204 = vst [vmem:[#allocation11 + $0xa0] sm:$0xff] %v2172_v4 }
 0x2d2   : > { %2205 = vst [vmem:[#allocation11 + $0xa8] sm:$0xff] %v2173_v29 }
 0x2d3   : > { %2206 = vst [vmem:[#allocation11 + $0xb0] sm:$0xff] %v2174_v0 }
 0x2d4   : > { %2207 = vst [vmem:[#allocation11 + $0xb8] sm:$0xff] %v2175_v39 }
 0x2d5   : > { %2208 = vst [vmem:[#allocation11 + $0xc0] sm:$0xff] %v2176_v62 }
 0x2d6   : > { %2209 = vst [vmem:[#allocation11 + $0xc8] sm:$0xff] %v2177_v15 }
 0x2d7   : > { %2210 = vst [vmem:[#allocation11 + $0xd0] sm:$0xff] %v2178_v27 }
 0x2d8   : > { %2211 = vst [vmem:[#allocation11 + $0xd8] sm:$0xff] %v2179_v13 }
 0x2d9   : > { %2212 = vst [vmem:[#allocation11 + $0xe0] sm:$0xff] %v2180_v51 }
 0x2da   : > { %2213 = vst [vmem:[#allocation11 + $0xe8] sm:$0xff] %v2181_v53 }
 0x2db   : > { %2214 = vst [vmem:[#allocation11 + $0xf0] sm:$0xff] %v2182_v1 }
 0x2dc   : > { %2215 = vst [vmem:[#allocation11 + $0xf8] sm:$0xff] %v2183_v3 }
 0x2dd PF: > { %p2442_p4 = scmp.eq.s32.totalorder %s2943_s23, 1  ;;  %s2227_s30 = sshll.u32 %s4907_s4, 4  ;;  %s2228_s30 = int_to_ptr.hbm [resolvable:$true] %s2227_s30 }
 0x2de   : > { %s2843_s5 = smov [#allocation11]   ;;  %s2844_s29 = smov 256  }
 0x2df   : > { %s2225_s25 = sshll.u32 %s2843_s5, 4  ;;  %s2845_s15 = smov 16   ;;  %s2226_s25 = int_to_ptr.vmem [resolvable:$true] %s2225_s25 }
 0x2e0   : > { %2422 = dma.vmem_to_hbm [thread:$0]  (%p2442_p4), %s2226_s25, 4096, %s2228_s30, [#allocation5], %s2844_s29, %s2844_s29, %s2845_s15  }
 0x2e1   : > { %2812 = dma.done.wait (%p2442_p4), [#allocation5], 4096  }
 0x2e2   : > { %2814 = vsyncadd (%p2442_p4), [#allocation5], 4294963200 }
 0x2e3 PF: > { %s22_s20 = sadd.s32 1, %s2837_s20   ;;  %s5084_s15 = smov %s2821_s16 }
 0x2e4   : > { %p19_p5 = scmp.ge.s32.totalorder %s22_s20, 4   ;;  %s5085_s16 = smov %s2825_s17 }
 0x2e5   : > { %s5086_s17 = smov %s2918_s27  ;;  %s5087_s18 = smov %s2833_s19 }
 0x2e6   : > { %s5088_s19 = smov %s5090_s21  ;;  %21 = sbr.rel (!%p19_p5) target bundleno = 12 (0xc), region = 116 }
 0x2eb   :  { %2244 = vsyncpa [#allocation4], 1 }
 0x2ec   :  { %2246 = vsyncpa [#allocation4 + $0x1], 1 }
 0x2ed   :  { %2247 = vsyncpa [#allocation7], 1 }
 0x2ee   :  { %2249 = vsyncpa [#allocation7 + $0x1], 1 }
 0x2ef   :  { %2250 = vsyncpa [#allocation10], 1 }
 0x2f0   :  { %2252 = vsyncpa [#allocation10 + $0x1], 1 }
 0x2f1   :  { %2253 = vsyncpa [#allocation5], 1 }
 0x2f2   :  { %2255 = vsyncpa [#allocation5 + $0x1], 1 }

</bundles_post_ra>
